<compile_context>
chip_gen: v7x
topology: tpu7x:2x2x1
jax: 0.10.0
libtpu: 0.0.40
codegen_flags: <defaults>
</compile_context>

<pallas_src>
import functools

import jax
import jax.numpy as jnp
from jax.experimental import pallas as pl
from jax.experimental.pallas import tpu as pltpu


# ----------------------------------------------------------------------------
# Fused decoder-stack kernel
# ----------------------------------------------------------------------------

def _decoder_stack_kernel(
    # inputs ------------------------------------------------------------------
    x_ref, mem_ref, tbias_ref, mbias_ref,
    sa_wqkv_ref, sa_bqkv_ref, sa_wo_ref, sa_bo_ref,
    ma_wq_ref, ma_bq_ref, ma_wkv_ref, ma_bkv_ref, ma_wo_ref, ma_bo_ref,
    ff_w1_ref, ff_b1_ref, ff_w2_ref, ff_b2_ref,
    ln_g_ref, ln_b_ref,
    gen_w_ref, gen_b_ref,
    # outputs -----------------------------------------------------------------
    out_ref,
    # scratch -----------------------------------------------------------------
    x_s,
    *, num_heads, dim_head, inv_temp, eps):
  """One (batch, layer) grid step of the fused decoder stack."""
  D = num_heads * dim_head
  layer = pl.program_id(1)

  # Load the residual stream into VMEM scratch at the first layer of each batch.
  @pl.when(layer == 0)
  def _():
    x_s[...] = x_ref[0]

  x = x_s[...]                       # (L, D)  residual stream
  mem = mem_ref[0]                   # (Lm, D)
  tbias = tbias_ref[0]               # (L, L)   additive mask bias (0 / -1e30)
  mbias = mbias_ref[0]               # (L, Lm)

  def layernorm(y, g, b):
    mean = jnp.mean(y, axis=-1, keepdims=True)
    cent = y - mean
    var = jnp.mean(cent * cent, axis=-1, keepdims=True)
    return cent * jax.lax.rsqrt(var + eps) * g + b

  def sdpa(q, k, v, bias):
    # q: (Lq, D), k/v: (Lk, D), bias: (Lq, Lk).  Per-head static unroll; the
    # scores matmul contracts the head dim via dot_general ("A @ B^T") so no
    # explicit transpose materializes.
    outs = []
    for h in range(num_heads):
      lo = h * dim_head
      qh = q[:, lo:lo + dim_head]
      kh = k[:, lo:lo + dim_head]
      vh = v[:, lo:lo + dim_head]
      s = jax.lax.dot_general(
          qh, kh, (((1,), (1,)), ((), ())),
          preferred_element_type=jnp.float32) * inv_temp
      s = s + bias
      s = s - jnp.max(s, axis=-1, keepdims=True)
      p = jnp.exp(s)
      p = p * pl.reciprocal(jnp.sum(p, axis=-1, keepdims=True), approx=True)
      outs.append(jnp.dot(p, vh, preferred_element_type=jnp.float32))
    return jnp.concatenate(outs, axis=-1)          # (Lq, D)

  ln_g = ln_g_ref[0]                 # (3, D)
  ln_b = ln_b_ref[0]                 # (3, D)

  # ---- self-attention + residual + LayerNorm --------------------------------
  qkv = jnp.dot(x, sa_wqkv_ref[0],
                preferred_element_type=jnp.float32) + sa_bqkv_ref[0]
  q = qkv[:, :D]
  k = qkv[:, D:2 * D]
  v = qkv[:, 2 * D:]
  attn = sdpa(q, k, v, tbias)
  attn = jnp.dot(attn, sa_wo_ref[0],
                 preferred_element_type=jnp.float32) + sa_bo_ref[0]
  x = layernorm(attn + x, ln_g[0:1, :], ln_b[0:1, :])

  # ---- cross (memory) attention + residual + LayerNorm ----------------------
  qm = jnp.dot(x, ma_wq_ref[0],
               preferred_element_type=jnp.float32) + ma_bq_ref[0]
  kvm = jnp.dot(mem, ma_wkv_ref[0],
                preferred_element_type=jnp.float32) + ma_bkv_ref[0]
  km = kvm[:, :D]
  vm = kvm[:, D:]
  mattn = sdpa(qm, km, vm, mbias)
  mattn = jnp.dot(mattn, ma_wo_ref[0],
                  preferred_element_type=jnp.float32) + ma_bo_ref[0]
  x = layernorm(mattn + x, ln_g[1:2, :], ln_b[1:2, :])

  # ---- FFN: Linear -> ReLU -> Linear -> ReLU (+ residual + LayerNorm) -------
  h1 = jnp.maximum(
      jnp.dot(x, ff_w1_ref[0], preferred_element_type=jnp.float32)
      + ff_b1_ref[0], 0.0)
  h2 = jnp.maximum(
      jnp.dot(h1, ff_w2_ref[0], preferred_element_type=jnp.float32)
      + ff_b2_ref[0], 0.0)
  x = layernorm(h2 + x, ln_g[2:3, :], ln_b[2:3, :])

  x_s[...] = x

  # ---- generator (vocab projection) on the last layer -----------------------
  @pl.when(layer == pl.num_programs(1) - 1)
  def _():
    logits = jnp.dot(x, gen_w_ref[...],
                     preferred_element_type=jnp.float32) + gen_b_ref[...]
    out_ref[0] = logits.astype(out_ref.dtype)


def transformer_decoder(params, x, memory, memory_mask, targets_mask, *, num_heads):
  """x: (B, L, D), memory: (B, Lm, D), masks: (B, L, L*) with 1 == masked."""
  B, L, D = x.shape
  Lm = memory.shape[1]
  NL = params["sa_wqkv"].shape[0]
  F = params["ff_w1"].shape[2]
  V = params["gen_w"].shape[1]
  dim_head = D // num_heads
  inv_temp = 1.0 / (float(D) ** 0.5)          # temperature = dim_model ** 0.5

  # Additive mask bias, computed once (not per layer / per head).
  neg = jnp.float32(-1e30)
  tbias = targets_mask.astype(jnp.float32) * neg
  mbias = memory_mask.astype(jnp.float32) * neg

  kernel = functools.partial(
      _decoder_stack_kernel, num_heads=num_heads, dim_head=dim_head,
      inv_temp=inv_temp, eps=1e-5)

  per_batch = lambda b, l: (b, 0, 0)
  per_layer = lambda b, l: (l, 0, 0)
  fixed2 = lambda b, l: (0, 0)

  in_specs = [
      pl.BlockSpec((1, L, D), per_batch),        # x
      pl.BlockSpec((1, Lm, D), per_batch),       # memory
      pl.BlockSpec((1, L, L), per_batch),        # targets bias
      pl.BlockSpec((1, L, Lm), per_batch),       # memory bias
      pl.BlockSpec((1, D, 3 * D), per_layer),    # sa_wqkv
      pl.BlockSpec((1, 1, 3 * D), per_layer),    # sa_bqkv
      pl.BlockSpec((1, D, D), per_layer),        # sa_wo
      pl.BlockSpec((1, 1, D), per_layer),        # sa_bo
      pl.BlockSpec((1, D, D), per_layer),        # ma_wq
      pl.BlockSpec((1, 1, D), per_layer),        # ma_bq
      pl.BlockSpec((1, D, 2 * D), per_layer),    # ma_wkv
      pl.BlockSpec((1, 1, 2 * D), per_layer),    # ma_bkv
      pl.BlockSpec((1, D, D), per_layer),        # ma_wo
      pl.BlockSpec((1, 1, D), per_layer),        # ma_bo
      pl.BlockSpec((1, D, F), per_layer),        # ff_w1
      pl.BlockSpec((1, 1, F), per_layer),        # ff_b1
      pl.BlockSpec((1, F, D), per_layer),        # ff_w2
      pl.BlockSpec((1, 1, D), per_layer),        # ff_b2
      pl.BlockSpec((1, 3, D), per_layer),        # ln_g (3 norms per layer)
      pl.BlockSpec((1, 3, D), per_layer),        # ln_b
      pl.BlockSpec((D, V), fixed2),              # gen_w
      pl.BlockSpec((1, V), fixed2),              # gen_b
  ]

  return pl.pallas_call(
      kernel,
      out_shape=jax.ShapeDtypeStruct((B, L, V), jnp.float32),
      grid=(B, NL),
      in_specs=in_specs,
      out_specs=pl.BlockSpec((1, L, V), per_batch),
      scratch_shapes=[pltpu.VMEM((L, D), jnp.float32)],
      compiler_params=pltpu.CompilerParams(
          dimension_semantics=("parallel", "arbitrary")),
  )(x, memory, tbias, mbias,
    params["sa_wqkv"], params["sa_bqkv"], params["sa_wo"], params["sa_bo"],
    params["ma_wq"], params["ma_bq"], params["ma_wkv"], params["ma_bkv"],
    params["ma_wo"], params["ma_bo"],
    params["ff_w1"], params["ff_b1"], params["ff_w2"], params["ff_b2"],
    params["ln_g"], params["ln_b"],
    params["gen_w"], params["gen_b"])


# ----------------------------------------------------------------------------
# Parameter init (PyTorch nn.Linear-style uniform; LayerNorm weight=1, bias=0)
# ----------------------------------------------------------------------------

def _init_linear(key, d_in, d_out):
  kw, kb = jax.random.split(key)
  scale = 1.0 / (d_in ** 0.5)
  w = jax.random.uniform(kw, (d_in, d_out), jnp.float32, -scale, scale)
  b = jax.random.uniform(kb, (d_out,), jnp.float32, -scale, scale)
  return w, b


def init_params(key, num_layers, dim_model, dim_ff, vocab_size):
  sa_wqkv, sa_bqkv, sa_wo, sa_bo = [], [], [], []
  ma_wq, ma_bq, ma_wkv, ma_bkv, ma_wo, ma_bo = [], [], [], [], [], []
  ff_w1, ff_b1, ff_w2, ff_b2 = [], [], [], []
  ln_g, ln_b = [], []
  for _ in range(num_layers):
    keys = jax.random.split(key, 11)
    key = keys[0]
    wq, bq = _init_linear(keys[1], dim_model, dim_model)
    wk, bk = _init_linear(keys[2], dim_model, dim_model)
    wv, bv = _init_linear(keys[3], dim_model, dim_model)
    wo, bo = _init_linear(keys[4], dim_model, dim_model)
    sa_wqkv.append(jnp.concatenate([wq, wk, wv], axis=1))
    sa_bqkv.append(jnp.concatenate([bq, bk, bv])[None, :])
    sa_wo.append(wo)
    sa_bo.append(bo[None, :])
    mq, mbq = _init_linear(keys[5], dim_model, dim_model)
    mk, mbk = _init_linear(keys[6], dim_model, dim_model)
    mv, mbv = _init_linear(keys[7], dim_model, dim_model)
    mo, mbo = _init_linear(keys[8], dim_model, dim_model)
    ma_wq.append(mq)
    ma_bq.append(mbq[None, :])
    ma_wkv.append(jnp.concatenate([mk, mv], axis=1))
    ma_bkv.append(jnp.concatenate([mbk, mbv])[None, :])
    ma_wo.append(mo)
    ma_bo.append(mbo[None, :])
    w1, b1 = _init_linear(keys[9], dim_model, dim_ff)
    w2, b2 = _init_linear(keys[10], dim_ff, dim_model)
    ff_w1.append(w1)
    ff_b1.append(b1[None, :])
    ff_w2.append(w2)
    ff_b2.append(b2[None, :])
    ln_g.append(jnp.ones((3, dim_model), jnp.float32))
    ln_b.append(jnp.zeros((3, dim_model), jnp.float32))
  key, kg = jax.random.split(key)
  gen_w, gen_b = _init_linear(kg, dim_model, vocab_size)
  return {
      "sa_wqkv": jnp.stack(sa_wqkv), "sa_bqkv": jnp.stack(sa_bqkv),
      "sa_wo": jnp.stack(sa_wo), "sa_bo": jnp.stack(sa_bo),
      "ma_wq": jnp.stack(ma_wq), "ma_bq": jnp.stack(ma_bq),
      "ma_wkv": jnp.stack(ma_wkv), "ma_bkv": jnp.stack(ma_bkv),
      "ma_wo": jnp.stack(ma_wo), "ma_bo": jnp.stack(ma_bo),
      "ff_w1": jnp.stack(ff_w1), "ff_b1": jnp.stack(ff_b1),
      "ff_w2": jnp.stack(ff_w2), "ff_b2": jnp.stack(ff_b2),
      "ln_g": jnp.stack(ln_g), "ln_b": jnp.stack(ln_b),
      "gen_w": gen_w, "gen_b": gen_b[None, :],
  }


# ----------------------------------------------------------------------------
# Pure-JAX reference (mirrors the PyTorch module, eval mode)
# ----------------------------------------------------------------------------

def _reference_decoder(params, x, memory, memory_mask, targets_mask, num_heads):
  B, L, D = x.shape
  H = num_heads
  Dh = D // H
  temp = float(D) ** 0.5
  NL = params["sa_wqkv"].shape[0]

  def split_heads(t):                           # (B, S, D) -> (B, H, S, Dh)
    return t.reshape(t.shape[0], t.shape[1], H, Dh).transpose(0, 2, 1, 3)

  def attention(q, k, v, mask):
    s = jnp.einsum("bhqd,bhkd->bhqk", q, k) / temp
    s = jnp.where(mask[:, None, :, :] > 0, -1e30, s)
    p = jax.nn.softmax(s, axis=-1)
    return jnp.einsum("bhqk,bhkd->bhqd", p, v)

  def layernorm(y, g, b, eps=1e-5):
    mean = y.mean(-1, keepdims=True)
    var = ((y - mean) ** 2).mean(-1, keepdims=True)
    return (y - mean) / jnp.sqrt(var + eps) * g + b

  out = x
  for l in range(NL):
    qkv = out @ params["sa_wqkv"][l] + params["sa_bqkv"][l]
    q, k, v = qkv[..., :D], qkv[..., D:2 * D], qkv[..., 2 * D:]
    a = attention(split_heads(q), split_heads(k), split_heads(v), targets_mask)
    a = a.transpose(0, 2, 1, 3).reshape(B, L, D)
    a = a @ params["sa_wo"][l] + params["sa_bo"][l]
    out = layernorm(a + out, params["ln_g"][l, 0], params["ln_b"][l, 0])

    qm = out @ params["ma_wq"][l] + params["ma_bq"][l]
    kvm = memory @ params["ma_wkv"][l] + params["ma_bkv"][l]
    km, vm = kvm[..., :D], kvm[..., D:]
    a = attention(split_heads(qm), split_heads(km), split_heads(vm), memory_mask)
    a = a.transpose(0, 2, 1, 3).reshape(B, L, D)
    a = a @ params["ma_wo"][l] + params["ma_bo"][l]
    out = layernorm(a + out, params["ln_g"][l, 1], params["ln_b"][l, 1])

    h1 = jnp.maximum(out @ params["ff_w1"][l] + params["ff_b1"][l], 0.0)
    h2 = jnp.maximum(h1 @ params["ff_w2"][l] + params["ff_b2"][l], 0.0)
    out = layernorm(h2 + out, params["ln_g"][l, 2], params["ln_b"][l, 2])

  return out @ params["gen_w"] + params["gen_b"]


# ----------------------------------------------------------------------------
# Main
# ----------------------------------------------------------------------------

if __name__ == "__main__":
  num_layers = 2
  dim_model = 32
  num_heads = 4
  dim_ff = 64
  vocab_size = 50
  batch = 2
  tgt_len = 8
  mem_len = 16

  root = jax.random.PRNGKey(0)
  k_params, k_x, k_mem = jax.random.split(root, 3)

  params = init_params(k_params, num_layers, dim_model, dim_ff, vocab_size)

  # x is already the embedded target sequence (forward applies no embedding).
  x = jax.random.normal(k_x, (batch, tgt_len, dim_model), jnp.float32)
  memory = jax.random.normal(k_mem, (batch, mem_len, dim_model), jnp.float32)

  # masks: 1 == position is masked (matches masked_fill semantics).
  row = jnp.arange(tgt_len)[:, None]
  col = jnp.arange(tgt_len)[None, :]
  targets_mask = jnp.broadcast_to((col > row).astype(jnp.int32),
                                  (batch, tgt_len, tgt_len))
  mem_masked = (jnp.arange(mem_len)[None, :] >= (mem_len - 4)).astype(jnp.int32)
  memory_mask = jnp.broadcast_to(mem_masked[None, :, :],
                                 (batch, tgt_len, mem_len))

  fwd = jax.jit(functools.partial(transformer_decoder, num_heads=num_heads))
  out = jax.block_until_ready(fwd(params, x, memory, memory_mask, targets_mask))

  ref = _reference_decoder(params, x, memory, memory_mask, targets_mask, num_heads)

  assert out.shape == (batch, tgt_len, vocab_size)
  assert bool(jnp.all(jnp.isfinite(out)))
  max_err = float(jnp.max(jnp.abs(out - ref)))
  assert max_err < 5e-2, f"kernel/reference mismatch: max abs err {max_err}"
  print("KERNEL_OK")
</pallas_src>

<mosaic_0001>
module attributes {stable_mosaic.version = 11 : i64} {
  func.func @_decoder_stack_kernel(%arg0: i32, %arg1: i32, %arg2: memref<1x8x32xf32, #tpu.memory_space<vmem>>, %arg3: memref<1x16x32xf32, #tpu.memory_space<vmem>>, %arg4: memref<1x8x8xf32, #tpu.memory_space<vmem>>, %arg5: memref<1x8x16xf32, #tpu.memory_space<vmem>>, %arg6: memref<1x32x96xf32, #tpu.memory_space<vmem>>, %arg7: memref<1x1x96xf32, #tpu.memory_space<vmem>>, %arg8: memref<1x32x32xf32, #tpu.memory_space<vmem>>, %arg9: memref<1x1x32xf32, #tpu.memory_space<vmem>>, %arg10: memref<1x32x32xf32, #tpu.memory_space<vmem>>, %arg11: memref<1x1x32xf32, #tpu.memory_space<vmem>>, %arg12: memref<1x32x64xf32, #tpu.memory_space<vmem>>, %arg13: memref<1x1x64xf32, #tpu.memory_space<vmem>>, %arg14: memref<1x32x32xf32, #tpu.memory_space<vmem>>, %arg15: memref<1x1x32xf32, #tpu.memory_space<vmem>>, %arg16: memref<1x32x64xf32, #tpu.memory_space<vmem>>, %arg17: memref<1x1x64xf32, #tpu.memory_space<vmem>>, %arg18: memref<1x64x32xf32, #tpu.memory_space<vmem>>, %arg19: memref<1x1x32xf32, #tpu.memory_space<vmem>>, %arg20: memref<1x3x32xf32, #tpu.memory_space<vmem>>, %arg21: memref<1x3x32xf32, #tpu.memory_space<vmem>>, %arg22: memref<32x50xf32, #tpu.memory_space<vmem>>, %arg23: memref<1x50xf32, #tpu.memory_space<vmem>>, %arg24: memref<1x8x50xf32, #tpu.memory_space<vmem>>, %arg25: memref<8x32xf32, #tpu.memory_space<vmem>>) attributes {dimension_semantics = [#tpu.dimension_semantics<parallel>, #tpu.dimension_semantics<arbitrary>], iteration_bounds = array<i64: 2, 2>, scalar_prefetch = 0 : i64, scratch_operands = 1 : i64, tpu.core_type = #tpu.core_type<tc>, window_params = [{transform_indices = @transform_0, window_bounds = array<i64: 1, 8, 32>}, {transform_indices = @transform_1, window_bounds = array<i64: 1, 16, 32>}, {transform_indices = @transform_2, window_bounds = array<i64: 1, 8, 8>}, {transform_indices = @transform_3, window_bounds = array<i64: 1, 8, 16>}, {transform_indices = @transform_4, window_bounds = array<i64: 1, 32, 96>}, {transform_indices = @transform_5, window_bounds = array<i64: 1, 1, 96>}, {transform_indices = @transform_6, window_bounds = array<i64: 1, 32, 32>}, {transform_indices = @transform_7, window_bounds = array<i64: 1, 1, 32>}, {transform_indices = @transform_8, window_bounds = array<i64: 1, 32, 32>}, {transform_indices = @transform_9, window_bounds = array<i64: 1, 1, 32>}, {transform_indices = @transform_10, window_bounds = array<i64: 1, 32, 64>}, {transform_indices = @transform_11, window_bounds = array<i64: 1, 1, 64>}, {transform_indices = @transform_12, window_bounds = array<i64: 1, 32, 32>}, {transform_indices = @transform_13, window_bounds = array<i64: 1, 1, 32>}, {transform_indices = @transform_14, window_bounds = array<i64: 1, 32, 64>}, {transform_indices = @transform_15, window_bounds = array<i64: 1, 1, 64>}, {transform_indices = @transform_16, window_bounds = array<i64: 1, 64, 32>}, {transform_indices = @transform_17, window_bounds = array<i64: 1, 1, 32>}, {transform_indices = @transform_18, window_bounds = array<i64: 1, 3, 32>}, {transform_indices = @transform_19, window_bounds = array<i64: 1, 3, 32>}, {pipeline_mode = #tpu.pipeline_mode<synchronous>, transform_indices = @transform_20, window_bounds = array<i64: 32, 50>}, {pipeline_mode = #tpu.pipeline_mode<synchronous>, transform_indices = @transform_21, window_bounds = array<i64: 1, 50>}, {transform_indices = @transform_22, window_bounds = array<i64: 1, 8, 50>}]} {
    %c0_i32 = arith.constant 0 : i32
    %0 = arith.cmpi eq, %arg1, %c0_i32 : i32
    %1 = arith.extui %0 : i1 to i32
    %c0_i32_0 = arith.constant 0 : i32
    %2 = arith.cmpi ne, %1, %c0_i32_0 : i32
    scf.if %2 {
      %c0_125 = arith.constant 0 : index
      %c0_126 = arith.constant 0 : index
      %c0_127 = arith.constant 0 : index
      %291 = vector.load %arg2[%c0_125, %c0_126, %c0_127] : memref<1x8x32xf32, #tpu.memory_space<vmem>>, vector<1x8x32xf32>
      %292 = vector.shape_cast %291 : vector<1x8x32xf32> to vector<8x32xf32>
      %c0_128 = arith.constant 0 : index
      %c0_129 = arith.constant 0 : index
      %293 = vector.load %arg25[%c0_128, %c0_129] : memref<8x32xf32, #tpu.memory_space<vmem>>, vector<8x32xf32>
      tpu.vector_store %arg25[%c0_128, %c0_129], %292 {strides = array<i32>} : memref<8x32xf32, #tpu.memory_space<vmem>>, vector<8x32xf32>,
    } else {
    }
    %c0 = arith.constant 0 : index
    %c0_1 = arith.constant 0 : index
    %3 = vector.load %arg25[%c0, %c0_1] : memref<8x32xf32, #tpu.memory_space<vmem>>, vector<8x32xf32>
    %c0_2 = arith.constant 0 : index
    %c0_3 = arith.constant 0 : index
    %c0_4 = arith.constant 0 : index
    %4 = vector.load %arg3[%c0_2, %c0_3, %c0_4] : memref<1x16x32xf32, #tpu.memory_space<vmem>>, vector<1x16x32xf32>
    %5 = vector.shape_cast %4 : vector<1x16x32xf32> to vector<16x32xf32>
    %c0_5 = arith.constant 0 : index
    %c0_6 = arith.constant 0 : index
    %c0_7 = arith.constant 0 : index
    %6 = vector.load %arg4[%c0_5, %c0_6, %c0_7] : memref<1x8x8xf32, #tpu.memory_space<vmem>>, vector<1x8x8xf32>
    %7 = vector.shape_cast %6 : vector<1x8x8xf32> to vector<8x8xf32>
    %c0_8 = arith.constant 0 : index
    %c0_9 = arith.constant 0 : index
    %c0_10 = arith.constant 0 : index
    %8 = vector.load %arg5[%c0_8, %c0_9, %c0_10] : memref<1x8x16xf32, #tpu.memory_space<vmem>>, vector<1x8x16xf32>
    %9 = vector.shape_cast %8 : vector<1x8x16xf32> to vector<8x16xf32>
    %c0_11 = arith.constant 0 : index
    %c0_12 = arith.constant 0 : index
    %c0_13 = arith.constant 0 : index
    %10 = vector.load %arg20[%c0_11, %c0_12, %c0_13] : memref<1x3x32xf32, #tpu.memory_space<vmem>>, vector<1x3x32xf32>
    %11 = vector.shape_cast %10 : vector<1x3x32xf32> to vector<3x32xf32>
    %c0_14 = arith.constant 0 : index
    %c0_15 = arith.constant 0 : index
    %c0_16 = arith.constant 0 : index
    %12 = vector.load %arg21[%c0_14, %c0_15, %c0_16] : memref<1x3x32xf32, #tpu.memory_space<vmem>>, vector<1x3x32xf32>
    %13 = vector.shape_cast %12 : vector<1x3x32xf32> to vector<3x32xf32>
    %c0_17 = arith.constant 0 : index
    %c0_18 = arith.constant 0 : index
    %c0_19 = arith.constant 0 : index
    %14 = vector.load %arg6[%c0_17, %c0_18, %c0_19] : memref<1x32x96xf32, #tpu.memory_space<vmem>>, vector<1x32x96xf32>
    %15 = vector.shape_cast %14 : vector<1x32x96xf32> to vector<32x96xf32>
    %cst = arith.constant dense<0.000000e+00> : vector<8x96xf32>
    %16 = tpu.matmul %3, %15, %cst {dimension_numbers = #tpu.dot_dimension_numbers<[1], [0], [0], [1], [0, 0, 1, 1], [], []>} : vector<8x32xf32>, vector<32x96xf32>, vector<8x96xf32> -> vector<8x96xf32>
    %c0_20 = arith.constant 0 : index
    %c0_21 = arith.constant 0 : index
    %c0_22 = arith.constant 0 : index
    %17 = vector.load %arg7[%c0_20, %c0_21, %c0_22] : memref<1x1x96xf32, #tpu.memory_space<vmem>>, vector<1x1x96xf32>
    %18 = vector.shape_cast %17 : vector<1x1x96xf32> to vector<1x96xf32>
    %19 = vector.broadcast %18 : vector<1x96xf32> to vector<8x96xf32>
    %20 = arith.addf %16, %19 : vector<8x96xf32>
    %21 = vector.extract_strided_slice %20 {offsets = [0, 0], sizes = [8, 32], strides = [1, 1]} : vector<8x96xf32> to vector<8x32xf32>
    %22 = vector.extract_strided_slice %20 {offsets = [0, 32], sizes = [8, 32], strides = [1, 1]} : vector<8x96xf32> to vector<8x32xf32>
    %23 = vector.extract_strided_slice %20 {offsets = [0, 64], sizes = [8, 32], strides = [1, 1]} : vector<8x96xf32> to vector<8x32xf32>
    %24 = vector.extract_strided_slice %21 {offsets = [0, 0], sizes = [8, 8], strides = [1, 1]} : vector<8x32xf32> to vector<8x8xf32>
    %25 = vector.extract_strided_slice %22 {offsets = [0, 0], sizes = [8, 8], strides = [1, 1]} : vector<8x32xf32> to vector<8x8xf32>
    %26 = vector.extract_strided_slice %23 {offsets = [0, 0], sizes = [8, 8], strides = [1, 1]} : vector<8x32xf32> to vector<8x8xf32>
    %cst_23 = arith.constant dense<0.000000e+00> : vector<8x8xf32>
    %27 = tpu.matmul %24, %25, %cst_23 {dimension_numbers = #tpu.dot_dimension_numbers<[1], [1], [0], [0], [0, 0, 1, 0], [], []>} : vector<8x8xf32>, vector<8x8xf32>, vector<8x8xf32> -> vector<8x8xf32>
    %cst_24 = arith.constant 0.176776692 : f32
    %28 = vector.broadcast %cst_24 : f32 to vector<8x8xf32>
    %29 = arith.mulf %27, %28 : vector<8x8xf32>
    %30 = arith.addf %29, %7 : vector<8x8xf32>
    %cst_25 = arith.constant dense<0xFF800000> : vector<8xf32>
    %31 = vector.multi_reduction <maximumf>, %30, %cst_25 [1] : vector<8x8xf32> to vector<8xf32>
    %32 = vector.shape_cast %31 : vector<8xf32> to vector<8x1xf32>
    %33 = vector.broadcast %32 : vector<8x1xf32> to vector<8x8xf32>
    %34 = arith.subf %30, %33 : vector<8x8xf32>
    %35 = math.exp %34 : vector<8x8xf32>
    %cst_26 = arith.constant dense<0.000000e+00> : vector<8xf32>
    %36 = vector.multi_reduction <add>, %35, %cst_26 [1] : vector<8x8xf32> to vector<8xf32>
    %37 = vector.shape_cast %36 : vector<8xf32> to vector<8x1xf32>
    %38 = tpu.reciprocal %37 {approx = true} : vector<8x1xf32> -> vector<8x1xf32>
    %39 = vector.broadcast %38 : vector<8x1xf32> to vector<8x8xf32>
    %40 = arith.mulf %35, %39 : vector<8x8xf32>
    %cst_27 = arith.constant dense<0.000000e+00> : vector<8x8xf32>
    %41 = tpu.matmul %40, %26, %cst_27 {dimension_numbers = #tpu.dot_dimension_numbers<[1], [0], [0], [1], [0, 0, 1, 1], [], []>} : vector<8x8xf32>, vector<8x8xf32>, vector<8x8xf32> -> vector<8x8xf32>
    %42 = vector.extract_strided_slice %21 {offsets = [0, 8], sizes = [8, 8], strides = [1, 1]} : vector<8x32xf32> to vector<8x8xf32>
    %43 = vector.extract_strided_slice %22 {offsets = [0, 8], sizes = [8, 8], strides = [1, 1]} : vector<8x32xf32> to vector<8x8xf32>
    %44 = vector.extract_strided_slice %23 {offsets = [0, 8], sizes = [8, 8], strides = [1, 1]} : vector<8x32xf32> to vector<8x8xf32>
    %cst_28 = arith.constant dense<0.000000e+00> : vector<8x8xf32>
    %45 = tpu.matmul %42, %43, %cst_28 {dimension_numbers = #tpu.dot_dimension_numbers<[1], [1], [0], [0], [0, 0, 1, 0], [], []>} : vector<8x8xf32>, vector<8x8xf32>, vector<8x8xf32> -> vector<8x8xf32>
    %cst_29 = arith.constant 0.176776692 : f32
    %46 = vector.broadcast %cst_29 : f32 to vector<8x8xf32>
    %47 = arith.mulf %45, %46 : vector<8x8xf32>
    %48 = arith.addf %47, %7 : vector<8x8xf32>
    %cst_30 = arith.constant dense<0xFF800000> : vector<8xf32>
    %49 = vector.multi_reduction <maximumf>, %48, %cst_30 [1] : vector<8x8xf32> to vector<8xf32>
    %50 = vector.shape_cast %49 : vector<8xf32> to vector<8x1xf32>
    %51 = vector.broadcast %50 : vector<8x1xf32> to vector<8x8xf32>
    %52 = arith.subf %48, %51 : vector<8x8xf32>
    %53 = math.exp %52 : vector<8x8xf32>
    %cst_31 = arith.constant dense<0.000000e+00> : vector<8xf32>
    %54 = vector.multi_reduction <add>, %53, %cst_31 [1] : vector<8x8xf32> to vector<8xf32>
    %55 = vector.shape_cast %54 : vector<8xf32> to vector<8x1xf32>
    %56 = tpu.reciprocal %55 {approx = true} : vector<8x1xf32> -> vector<8x1xf32>
    %57 = vector.broadcast %56 : vector<8x1xf32> to vector<8x8xf32>
    %58 = arith.mulf %53, %57 : vector<8x8xf32>
    %cst_32 = arith.constant dense<0.000000e+00> : vector<8x8xf32>
    %59 = tpu.matmul %58, %44, %cst_32 {dimension_numbers = #tpu.dot_dimension_numbers<[1], [0], [0], [1], [0, 0, 1, 1], [], []>} : vector<8x8xf32>, vector<8x8xf32>, vector<8x8xf32> -> vector<8x8xf32>
    %60 = vector.extract_strided_slice %21 {offsets = [0, 16], sizes = [8, 8], strides = [1, 1]} : vector<8x32xf32> to vector<8x8xf32>
    %61 = vector.extract_strided_slice %22 {offsets = [0, 16], sizes = [8, 8], strides = [1, 1]} : vector<8x32xf32> to vector<8x8xf32>
    %62 = vector.extract_strided_slice %23 {offsets = [0, 16], sizes = [8, 8], strides = [1, 1]} : vector<8x32xf32> to vector<8x8xf32>
    %cst_33 = arith.constant dense<0.000000e+00> : vector<8x8xf32>
    %63 = tpu.matmul %60, %61, %cst_33 {dimension_numbers = #tpu.dot_dimension_numbers<[1], [1], [0], [0], [0, 0, 1, 0], [], []>} : vector<8x8xf32>, vector<8x8xf32>, vector<8x8xf32> -> vector<8x8xf32>
    %cst_34 = arith.constant 0.176776692 : f32
    %64 = vector.broadcast %cst_34 : f32 to vector<8x8xf32>
    %65 = arith.mulf %63, %64 : vector<8x8xf32>
    %66 = arith.addf %65, %7 : vector<8x8xf32>
    %cst_35 = arith.constant dense<0xFF800000> : vector<8xf32>
    %67 = vector.multi_reduction <maximumf>, %66, %cst_35 [1] : vector<8x8xf32> to vector<8xf32>
    %68 = vector.shape_cast %67 : vector<8xf32> to vector<8x1xf32>
    %69 = vector.broadcast %68 : vector<8x1xf32> to vector<8x8xf32>
    %70 = arith.subf %66, %69 : vector<8x8xf32>
    %71 = math.exp %70 : vector<8x8xf32>
    %cst_36 = arith.constant dense<0.000000e+00> : vector<8xf32>
    %72 = vector.multi_reduction <add>, %71, %cst_36 [1] : vector<8x8xf32> to vector<8xf32>
    %73 = vector.shape_cast %72 : vector<8xf32> to vector<8x1xf32>
    %74 = tpu.reciprocal %73 {approx = true} : vector<8x1xf32> -> vector<8x1xf32>
    %75 = vector.broadcast %74 : vector<8x1xf32> to vector<8x8xf32>
    %76 = arith.mulf %71, %75 : vector<8x8xf32>
    %cst_37 = arith.constant dense<0.000000e+00> : vector<8x8xf32>
    %77 = tpu.matmul %76, %62, %cst_37 {dimension_numbers = #tpu.dot_dimension_numbers<[1], [0], [0], [1], [0, 0, 1, 1], [], []>} : vector<8x8xf32>, vector<8x8xf32>, vector<8x8xf32> -> vector<8x8xf32>
    %78 = vector.extract_strided_slice %21 {offsets = [0, 24], sizes = [8, 8], strides = [1, 1]} : vector<8x32xf32> to vector<8x8xf32>
    %79 = vector.extract_strided_slice %22 {offsets = [0, 24], sizes = [8, 8], strides = [1, 1]} : vector<8x32xf32> to vector<8x8xf32>
    %80 = vector.extract_strided_slice %23 {offsets = [0, 24], sizes = [8, 8], strides = [1, 1]} : vector<8x32xf32> to vector<8x8xf32>
    %cst_38 = arith.constant dense<0.000000e+00> : vector<8x8xf32>
    %81 = tpu.matmul %78, %79, %cst_38 {dimension_numbers = #tpu.dot_dimension_numbers<[1], [1], [0], [0], [0, 0, 1, 0], [], []>} : vector<8x8xf32>, vector<8x8xf32>, vector<8x8xf32> -> vector<8x8xf32>
    %cst_39 = arith.constant 0.176776692 : f32
    %82 = vector.broadcast %cst_39 : f32 to vector<8x8xf32>
    %83 = arith.mulf %81, %82 : vector<8x8xf32>
    %84 = arith.addf %83, %7 : vector<8x8xf32>
    %cst_40 = arith.constant dense<0xFF800000> : vector<8xf32>
    %85 = vector.multi_reduction <maximumf>, %84, %cst_40 [1] : vector<8x8xf32> to vector<8xf32>
    %86 = vector.shape_cast %85 : vector<8xf32> to vector<8x1xf32>
    %87 = vector.broadcast %86 : vector<8x1xf32> to vector<8x8xf32>
    %88 = arith.subf %84, %87 : vector<8x8xf32>
    %89 = math.exp %88 : vector<8x8xf32>
    %cst_41 = arith.constant dense<0.000000e+00> : vector<8xf32>
    %90 = vector.multi_reduction <add>, %89, %cst_41 [1] : vector<8x8xf32> to vector<8xf32>
    %91 = vector.shape_cast %90 : vector<8xf32> to vector<8x1xf32>
    %92 = tpu.reciprocal %91 {approx = true} : vector<8x1xf32> -> vector<8x1xf32>
    %93 = vector.broadcast %92 : vector<8x1xf32> to vector<8x8xf32>
    %94 = arith.mulf %89, %93 : vector<8x8xf32>
    %cst_42 = arith.constant dense<0.000000e+00> : vector<8x8xf32>
    %95 = tpu.matmul %94, %80, %cst_42 {dimension_numbers = #tpu.dot_dimension_numbers<[1], [0], [0], [1], [0, 0, 1, 1], [], []>} : vector<8x8xf32>, vector<8x8xf32>, vector<8x8xf32> -> vector<8x8xf32>
    %96 = tpu.concatenate %41, %59, %77, %95 in 1 : vector<8x8xf32>, vector<8x8xf32>, vector<8x8xf32>, vector<8x8xf32> -> vector<8x32xf32>
    %c0_43 = arith.constant 0 : index
    %c0_44 = arith.constant 0 : index
    %c0_45 = arith.constant 0 : index
    %97 = vector.load %arg8[%c0_43, %c0_44, %c0_45] : memref<1x32x32xf32, #tpu.memory_space<vmem>>, vector<1x32x32xf32>
    %98 = vector.shape_cast %97 : vector<1x32x32xf32> to vector<32x32xf32>
    %cst_46 = arith.constant dense<0.000000e+00> : vector<8x32xf32>
    %99 = tpu.matmul %96, %98, %cst_46 {dimension_numbers = #tpu.dot_dimension_numbers<[1], [0], [0], [1], [0, 0, 1, 1], [], []>} : vector<8x32xf32>, vector<32x32xf32>, vector<8x32xf32> -> vector<8x32xf32>
    %c0_47 = arith.constant 0 : index
    %c0_48 = arith.constant 0 : index
    %c0_49 = arith.constant 0 : index
    %100 = vector.load %arg9[%c0_47, %c0_48, %c0_49] : memref<1x1x32xf32, #tpu.memory_space<vmem>>, vector<1x1x32xf32>
    %101 = vector.shape_cast %100 : vector<1x1x32xf32> to vector<1x32xf32>
    %102 = vector.broadcast %101 : vector<1x32xf32> to vector<8x32xf32>
    %103 = arith.addf %99, %102 : vector<8x32xf32>
    %104 = arith.addf %103, %3 : vector<8x32xf32>
    %105 = vector.extract_strided_slice %11 {offsets = [0, 0], sizes = [1, 32], strides = [1, 1]} : vector<3x32xf32> to vector<1x32xf32>
    %106 = vector.extract_strided_slice %13 {offsets = [0, 0], sizes = [1, 32], strides = [1, 1]} : vector<3x32xf32> to vector<1x32xf32>
    %cst_50 = arith.constant dense<0.000000e+00> : vector<8xf32>
    %107 = vector.multi_reduction <add>, %104, %cst_50 [1] : vector<8x32xf32> to vector<8xf32>
    %108 = vector.shape_cast %107 : vector<8xf32> to vector<8x1xf32>
    %cst_51 = arith.constant 3.200000e+01 : f32
    %109 = vector.broadcast %cst_51 : f32 to vector<8x1xf32>
    %110 = arith.divf %108, %109 : vector<8x1xf32>
    %111 = vector.broadcast %110 : vector<8x1xf32> to vector<8x32xf32>
    %112 = arith.subf %104, %111 : vector<8x32xf32>
    %113 = arith.mulf %112, %112 : vector<8x32xf32>
    %cst_52 = arith.constant dense<0.000000e+00> : vector<8xf32>
    %114 = vector.multi_reduction <add>, %113, %cst_52 [1] : vector<8x32xf32> to vector<8xf32>
    %115 = vector.shape_cast %114 : vector<8xf32> to vector<8x1xf32>
    %cst_53 = arith.constant 3.200000e+01 : f32
    %116 = vector.broadcast %cst_53 : f32 to vector<8x1xf32>
    %117 = arith.divf %115, %116 : vector<8x1xf32>
    %cst_54 = arith.constant 9.99999974E-6 : f32
    %118 = vector.broadcast %cst_54 : f32 to vector<8x1xf32>
    %119 = arith.addf %117, %118 : vector<8x1xf32>
    %120 = math.rsqrt %119 : vector<8x1xf32>
    %121 = vector.broadcast %120 : vector<8x1xf32> to vector<8x32xf32>
    %122 = arith.mulf %112, %121 : vector<8x32xf32>
    %123 = vector.broadcast %105 : vector<1x32xf32> to vector<8x32xf32>
    %124 = arith.mulf %122, %123 : vector<8x32xf32>
    %125 = vector.broadcast %106 : vector<1x32xf32> to vector<8x32xf32>
    %126 = arith.addf %124, %125 : vector<8x32xf32>
    %c0_55 = arith.constant 0 : index
    %c0_56 = arith.constant 0 : index
    %c0_57 = arith.constant 0 : index
    %127 = vector.load %arg10[%c0_55, %c0_56, %c0_57] : memref<1x32x32xf32, #tpu.memory_space<vmem>>, vector<1x32x32xf32>
    %128 = vector.shape_cast %127 : vector<1x32x32xf32> to vector<32x32xf32>
    %cst_58 = arith.constant dense<0.000000e+00> : vector<8x32xf32>
    %129 = tpu.matmul %126, %128, %cst_58 {dimension_numbers = #tpu.dot_dimension_numbers<[1], [0], [0], [1], [0, 0, 1, 1], [], []>} : vector<8x32xf32>, vector<32x32xf32>, vector<8x32xf32> -> vector<8x32xf32>
    %c0_59 = arith.constant 0 : index
    %c0_60 = arith.constant 0 : index
    %c0_61 = arith.constant 0 : index
    %130 = vector.load %arg11[%c0_59, %c0_60, %c0_61] : memref<1x1x32xf32, #tpu.memory_space<vmem>>, vector<1x1x32xf32>
    %131 = vector.shape_cast %130 : vector<1x1x32xf32> to vector<1x32xf32>
    %132 = vector.broadcast %131 : vector<1x32xf32> to vector<8x32xf32>
    %133 = arith.addf %129, %132 : vector<8x32xf32>
    %c0_62 = arith.constant 0 : index
    %c0_63 = arith.constant 0 : index
    %c0_64 = arith.constant 0 : index
    %134 = vector.load %arg12[%c0_62, %c0_63, %c0_64] : memref<1x32x64xf32, #tpu.memory_space<vmem>>, vector<1x32x64xf32>
    %135 = vector.shape_cast %134 : vector<1x32x64xf32> to vector<32x64xf32>
    %cst_65 = arith.constant dense<0.000000e+00> : vector<16x64xf32>
    %136 = tpu.matmul %5, %135, %cst_65 {dimension_numbers = #tpu.dot_dimension_numbers<[1], [0], [0], [1], [0, 0, 1, 1], [], []>} : vector<16x32xf32>, vector<32x64xf32>, vector<16x64xf32> -> vector<16x64xf32>
    %c0_66 = arith.constant 0 : index
    %c0_67 = arith.constant 0 : index
    %c0_68 = arith.constant 0 : index
    %137 = vector.load %arg13[%c0_66, %c0_67, %c0_68] : memref<1x1x64xf32, #tpu.memory_space<vmem>>, vector<1x1x64xf32>
    %138 = vector.shape_cast %137 : vector<1x1x64xf32> to vector<1x64xf32>
    %139 = vector.broadcast %138 : vector<1x64xf32> to vector<16x64xf32>
    %140 = arith.addf %136, %139 : vector<16x64xf32>
    %141 = vector.extract_strided_slice %140 {offsets = [0, 0], sizes = [16, 32], strides = [1, 1]} : vector<16x64xf32> to vector<16x32xf32>
    %142 = vector.extract_strided_slice %140 {offsets = [0, 32], sizes = [16, 32], strides = [1, 1]} : vector<16x64xf32> to vector<16x32xf32>
    %143 = vector.extract_strided_slice %133 {offsets = [0, 0], sizes = [8, 8], strides = [1, 1]} : vector<8x32xf32> to vector<8x8xf32>
    %144 = vector.extract_strided_slice %141 {offsets = [0, 0], sizes = [16, 8], strides = [1, 1]} : vector<16x32xf32> to vector<16x8xf32>
    %145 = vector.extract_strided_slice %142 {offsets = [0, 0], sizes = [16, 8], strides = [1, 1]} : vector<16x32xf32> to vector<16x8xf32>
    %cst_69 = arith.constant dense<0.000000e+00> : vector<8x16xf32>
    %146 = tpu.matmul %143, %144, %cst_69 {dimension_numbers = #tpu.dot_dimension_numbers<[1], [1], [0], [0], [0, 0, 1, 0], [], []>} : vector<8x8xf32>, vector<16x8xf32>, vector<8x16xf32> -> vector<8x16xf32>
    %cst_70 = arith.constant 0.176776692 : f32
    %147 = vector.broadcast %cst_70 : f32 to vector<8x16xf32>
    %148 = arith.mulf %146, %147 : vector<8x16xf32>
    %149 = arith.addf %148, %9 : vector<8x16xf32>
    %cst_71 = arith.constant dense<0xFF800000> : vector<8xf32>
    %150 = vector.multi_reduction <maximumf>, %149, %cst_71 [1] : vector<8x16xf32> to vector<8xf32>
    %151 = vector.shape_cast %150 : vector<8xf32> to vector<8x1xf32>
    %152 = vector.broadcast %151 : vector<8x1xf32> to vector<8x16xf32>
    %153 = arith.subf %149, %152 : vector<8x16xf32>
    %154 = math.exp %153 : vector<8x16xf32>
    %cst_72 = arith.constant dense<0.000000e+00> : vector<8xf32>
    %155 = vector.multi_reduction <add>, %154, %cst_72 [1] : vector<8x16xf32> to vector<8xf32>
    %156 = vector.shape_cast %155 : vector<8xf32> to vector<8x1xf32>
    %157 = tpu.reciprocal %156 {approx = true} : vector<8x1xf32> -> vector<8x1xf32>
    %158 = vector.broadcast %157 : vector<8x1xf32> to vector<8x16xf32>
    %159 = arith.mulf %154, %158 : vector<8x16xf32>
    %cst_73 = arith.constant dense<0.000000e+00> : vector<8x8xf32>
    %160 = tpu.matmul %159, %145, %cst_73 {dimension_numbers = #tpu.dot_dimension_numbers<[1], [0], [0], [1], [0, 0, 1, 1], [], []>} : vector<8x16xf32>, vector<16x8xf32>, vector<8x8xf32> -> vector<8x8xf32>
    %161 = vector.extract_strided_slice %133 {offsets = [0, 8], sizes = [8, 8], strides = [1, 1]} : vector<8x32xf32> to vector<8x8xf32>
    %162 = vector.extract_strided_slice %141 {offsets = [0, 8], sizes = [16, 8], strides = [1, 1]} : vector<16x32xf32> to vector<16x8xf32>
    %163 = vector.extract_strided_slice %142 {offsets = [0, 8], sizes = [16, 8], strides = [1, 1]} : vector<16x32xf32> to vector<16x8xf32>
    %cst_74 = arith.constant dense<0.000000e+00> : vector<8x16xf32>
    %164 = tpu.matmul %161, %162, %cst_74 {dimension_numbers = #tpu.dot_dimension_numbers<[1], [1], [0], [0], [0, 0, 1, 0], [], []>} : vector<8x8xf32>, vector<16x8xf32>, vector<8x16xf32> -> vector<8x16xf32>
    %cst_75 = arith.constant 0.176776692 : f32
    %165 = vector.broadcast %cst_75 : f32 to vector<8x16xf32>
    %166 = arith.mulf %164, %165 : vector<8x16xf32>
    %167 = arith.addf %166, %9 : vector<8x16xf32>
    %cst_76 = arith.constant dense<0xFF800000> : vector<8xf32>
    %168 = vector.multi_reduction <maximumf>, %167, %cst_76 [1] : vector<8x16xf32> to vector<8xf32>
    %169 = vector.shape_cast %168 : vector<8xf32> to vector<8x1xf32>
    %170 = vector.broadcast %169 : vector<8x1xf32> to vector<8x16xf32>
    %171 = arith.subf %167, %170 : vector<8x16xf32>
    %172 = math.exp %171 : vector<8x16xf32>
    %cst_77 = arith.constant dense<0.000000e+00> : vector<8xf32>
    %173 = vector.multi_reduction <add>, %172, %cst_77 [1] : vector<8x16xf32> to vector<8xf32>
    %174 = vector.shape_cast %173 : vector<8xf32> to vector<8x1xf32>
    %175 = tpu.reciprocal %174 {approx = true} : vector<8x1xf32> -> vector<8x1xf32>
    %176 = vector.broadcast %175 : vector<8x1xf32> to vector<8x16xf32>
    %177 = arith.mulf %172, %176 : vector<8x16xf32>
    %cst_78 = arith.constant dense<0.000000e+00> : vector<8x8xf32>
    %178 = tpu.matmul %177, %163, %cst_78 {dimension_numbers = #tpu.dot_dimension_numbers<[1], [0], [0], [1], [0, 0, 1, 1], [], []>} : vector<8x16xf32>, vector<16x8xf32>, vector<8x8xf32> -> vector<8x8xf32>
    %179 = vector.extract_strided_slice %133 {offsets = [0, 16], sizes = [8, 8], strides = [1, 1]} : vector<8x32xf32> to vector<8x8xf32>
    %180 = vector.extract_strided_slice %141 {offsets = [0, 16], sizes = [16, 8], strides = [1, 1]} : vector<16x32xf32> to vector<16x8xf32>
    %181 = vector.extract_strided_slice %142 {offsets = [0, 16], sizes = [16, 8], strides = [1, 1]} : vector<16x32xf32> to vector<16x8xf32>
    %cst_79 = arith.constant dense<0.000000e+00> : vector<8x16xf32>
    %182 = tpu.matmul %179, %180, %cst_79 {dimension_numbers = #tpu.dot_dimension_numbers<[1], [1], [0], [0], [0, 0, 1, 0], [], []>} : vector<8x8xf32>, vector<16x8xf32>, vector<8x16xf32> -> vector<8x16xf32>
    %cst_80 = arith.constant 0.176776692 : f32
    %183 = vector.broadcast %cst_80 : f32 to vector<8x16xf32>
    %184 = arith.mulf %182, %183 : vector<8x16xf32>
    %185 = arith.addf %184, %9 : vector<8x16xf32>
    %cst_81 = arith.constant dense<0xFF800000> : vector<8xf32>
    %186 = vector.multi_reduction <maximumf>, %185, %cst_81 [1] : vector<8x16xf32> to vector<8xf32>
    %187 = vector.shape_cast %186 : vector<8xf32> to vector<8x1xf32>
    %188 = vector.broadcast %187 : vector<8x1xf32> to vector<8x16xf32>
    %189 = arith.subf %185, %188 : vector<8x16xf32>
    %190 = math.exp %189 : vector<8x16xf32>
    %cst_82 = arith.constant dense<0.000000e+00> : vector<8xf32>
    %191 = vector.multi_reduction <add>, %190, %cst_82 [1] : vector<8x16xf32> to vector<8xf32>
    %192 = vector.shape_cast %191 : vector<8xf32> to vector<8x1xf32>
    %193 = tpu.reciprocal %192 {approx = true} : vector<8x1xf32> -> vector<8x1xf32>
    %194 = vector.broadcast %193 : vector<8x1xf32> to vector<8x16xf32>
    %195 = arith.mulf %190, %194 : vector<8x16xf32>
    %cst_83 = arith.constant dense<0.000000e+00> : vector<8x8xf32>
    %196 = tpu.matmul %195, %181, %cst_83 {dimension_numbers = #tpu.dot_dimension_numbers<[1], [0], [0], [1], [0, 0, 1, 1], [], []>} : vector<8x16xf32>, vector<16x8xf32>, vector<8x8xf32> -> vector<8x8xf32>
    %197 = vector.extract_strided_slice %133 {offsets = [0, 24], sizes = [8, 8], strides = [1, 1]} : vector<8x32xf32> to vector<8x8xf32>
    %198 = vector.extract_strided_slice %141 {offsets = [0, 24], sizes = [16, 8], strides = [1, 1]} : vector<16x32xf32> to vector<16x8xf32>
    %199 = vector.extract_strided_slice %142 {offsets = [0, 24], sizes = [16, 8], strides = [1, 1]} : vector<16x32xf32> to vector<16x8xf32>
    %cst_84 = arith.constant dense<0.000000e+00> : vector<8x16xf32>
    %200 = tpu.matmul %197, %198, %cst_84 {dimension_numbers = #tpu.dot_dimension_numbers<[1], [1], [0], [0], [0, 0, 1, 0], [], []>} : vector<8x8xf32>, vector<16x8xf32>, vector<8x16xf32> -> vector<8x16xf32>
    %cst_85 = arith.constant 0.176776692 : f32
    %201 = vector.broadcast %cst_85 : f32 to vector<8x16xf32>
    %202 = arith.mulf %200, %201 : vector<8x16xf32>
    %203 = arith.addf %202, %9 : vector<8x16xf32>
    %cst_86 = arith.constant dense<0xFF800000> : vector<8xf32>
    %204 = vector.multi_reduction <maximumf>, %203, %cst_86 [1] : vector<8x16xf32> to vector<8xf32>
    %205 = vector.shape_cast %204 : vector<8xf32> to vector<8x1xf32>
    %206 = vector.broadcast %205 : vector<8x1xf32> to vector<8x16xf32>
    %207 = arith.subf %203, %206 : vector<8x16xf32>
    %208 = math.exp %207 : vector<8x16xf32>
    %cst_87 = arith.constant dense<0.000000e+00> : vector<8xf32>
    %209 = vector.multi_reduction <add>, %208, %cst_87 [1] : vector<8x16xf32> to vector<8xf32>
    %210 = vector.shape_cast %209 : vector<8xf32> to vector<8x1xf32>
    %211 = tpu.reciprocal %210 {approx = true} : vector<8x1xf32> -> vector<8x1xf32>
    %212 = vector.broadcast %211 : vector<8x1xf32> to vector<8x16xf32>
    %213 = arith.mulf %208, %212 : vector<8x16xf32>
    %cst_88 = arith.constant dense<0.000000e+00> : vector<8x8xf32>
    %214 = tpu.matmul %213, %199, %cst_88 {dimension_numbers = #tpu.dot_dimension_numbers<[1], [0], [0], [1], [0, 0, 1, 1], [], []>} : vector<8x16xf32>, vector<16x8xf32>, vector<8x8xf32> -> vector<8x8xf32>
    %215 = tpu.concatenate %160, %178, %196, %214 in 1 : vector<8x8xf32>, vector<8x8xf32>, vector<8x8xf32>, vector<8x8xf32> -> vector<8x32xf32>
    %c0_89 = arith.constant 0 : index
    %c0_90 = arith.constant 0 : index
    %c0_91 = arith.constant 0 : index
    %216 = vector.load %arg14[%c0_89, %c0_90, %c0_91] : memref<1x32x32xf32, #tpu.memory_space<vmem>>, vector<1x32x32xf32>
    %217 = vector.shape_cast %216 : vector<1x32x32xf32> to vector<32x32xf32>
    %cst_92 = arith.constant dense<0.000000e+00> : vector<8x32xf32>
    %218 = tpu.matmul %215, %217, %cst_92 {dimension_numbers = #tpu.dot_dimension_numbers<[1], [0], [0], [1], [0, 0, 1, 1], [], []>} : vector<8x32xf32>, vector<32x32xf32>, vector<8x32xf32> -> vector<8x32xf32>
    %c0_93 = arith.constant 0 : index
    %c0_94 = arith.constant 0 : index
    %c0_95 = arith.constant 0 : index
    %219 = vector.load %arg15[%c0_93, %c0_94, %c0_95] : memref<1x1x32xf32, #tpu.memory_space<vmem>>, vector<1x1x32xf32>
    %220 = vector.shape_cast %219 : vector<1x1x32xf32> to vector<1x32xf32>
    %221 = vector.broadcast %220 : vector<1x32xf32> to vector<8x32xf32>
    %222 = arith.addf %218, %221 : vector<8x32xf32>
    %223 = arith.addf %222, %126 : vector<8x32xf32>
    %224 = vector.extract_strided_slice %11 {offsets = [1, 0], sizes = [1, 32], strides = [1, 1]} : vector<3x32xf32> to vector<1x32xf32>
    %225 = vector.extract_strided_slice %13 {offsets = [1, 0], sizes = [1, 32], strides = [1, 1]} : vector<3x32xf32> to vector<1x32xf32>
    %cst_96 = arith.constant dense<0.000000e+00> : vector<8xf32>
    %226 = vector.multi_reduction <add>, %223, %cst_96 [1] : vector<8x32xf32> to vector<8xf32>
    %227 = vector.shape_cast %226 : vector<8xf32> to vector<8x1xf32>
    %cst_97 = arith.constant 3.200000e+01 : f32
    %228 = vector.broadcast %cst_97 : f32 to vector<8x1xf32>
    %229 = arith.divf %227, %228 : vector<8x1xf32>
    %230 = vector.broadcast %229 : vector<8x1xf32> to vector<8x32xf32>
    %231 = arith.subf %223, %230 : vector<8x32xf32>
    %232 = arith.mulf %231, %231 : vector<8x32xf32>
    %cst_98 = arith.constant dense<0.000000e+00> : vector<8xf32>
    %233 = vector.multi_reduction <add>, %232, %cst_98 [1] : vector<8x32xf32> to vector<8xf32>
    %234 = vector.shape_cast %233 : vector<8xf32> to vector<8x1xf32>
    %cst_99 = arith.constant 3.200000e+01 : f32
    %235 = vector.broadcast %cst_99 : f32 to vector<8x1xf32>
    %236 = arith.divf %234, %235 : vector<8x1xf32>
    %cst_100 = arith.constant 9.99999974E-6 : f32
    %237 = vector.broadcast %cst_100 : f32 to vector<8x1xf32>
    %238 = arith.addf %236, %237 : vector<8x1xf32>
    %239 = math.rsqrt %238 : vector<8x1xf32>
    %240 = vector.broadcast %239 : vector<8x1xf32> to vector<8x32xf32>
    %241 = arith.mulf %231, %240 : vector<8x32xf32>
    %242 = vector.broadcast %224 : vector<1x32xf32> to vector<8x32xf32>
    %243 = arith.mulf %241, %242 : vector<8x32xf32>
    %244 = vector.broadcast %225 : vector<1x32xf32> to vector<8x32xf32>
    %245 = arith.addf %243, %244 : vector<8x32xf32>
    %c0_101 = arith.constant 0 : index
    %c0_102 = arith.constant 0 : index
    %c0_103 = arith.constant 0 : index
    %246 = vector.load %arg16[%c0_101, %c0_102, %c0_103] : memref<1x32x64xf32, #tpu.memory_space<vmem>>, vector<1x32x64xf32>
    %247 = vector.shape_cast %246 : vector<1x32x64xf32> to vector<32x64xf32>
    %cst_104 = arith.constant dense<0.000000e+00> : vector<8x64xf32>
    %248 = tpu.matmul %245, %247, %cst_104 {dimension_numbers = #tpu.dot_dimension_numbers<[1], [0], [0], [1], [0, 0, 1, 1], [], []>} : vector<8x32xf32>, vector<32x64xf32>, vector<8x64xf32> -> vector<8x64xf32>
    %c0_105 = arith.constant 0 : index
    %c0_106 = arith.constant 0 : index
    %c0_107 = arith.constant 0 : index
    %249 = vector.load %arg17[%c0_105, %c0_106, %c0_107] : memref<1x1x64xf32, #tpu.memory_space<vmem>>, vector<1x1x64xf32>
    %250 = vector.shape_cast %249 : vector<1x1x64xf32> to vector<1x64xf32>
    %251 = vector.broadcast %250 : vector<1x64xf32> to vector<8x64xf32>
    %252 = arith.addf %248, %251 : vector<8x64xf32>
    %cst_108 = arith.constant 0.000000e+00 : f32
    %253 = vector.broadcast %cst_108 : f32 to vector<8x64xf32>
    %254 = arith.maximumf %252, %253 : vector<8x64xf32>
    %c0_109 = arith.constant 0 : index
    %c0_110 = arith.constant 0 : index
    %c0_111 = arith.constant 0 : index
    %255 = vector.load %arg18[%c0_109, %c0_110, %c0_111] : memref<1x64x32xf32, #tpu.memory_space<vmem>>, vector<1x64x32xf32>
    %256 = vector.shape_cast %255 : vector<1x64x32xf32> to vector<64x32xf32>
    %cst_112 = arith.constant dense<0.000000e+00> : vector<8x32xf32>
    %257 = tpu.matmul %254, %256, %cst_112 {dimension_numbers = #tpu.dot_dimension_numbers<[1], [0], [0], [1], [0, 0, 1, 1], [], []>} : vector<8x64xf32>, vector<64x32xf32>, vector<8x32xf32> -> vector<8x32xf32>
    %c0_113 = arith.constant 0 : index
    %c0_114 = arith.constant 0 : index
    %c0_115 = arith.constant 0 : index
    %258 = vector.load %arg19[%c0_113, %c0_114, %c0_115] : memref<1x1x32xf32, #tpu.memory_space<vmem>>, vector<1x1x32xf32>
    %259 = vector.shape_cast %258 : vector<1x1x32xf32> to vector<1x32xf32>
    %260 = vector.broadcast %259 : vector<1x32xf32> to vector<8x32xf32>
    %261 = arith.addf %257, %260 : vector<8x32xf32>
    %cst_116 = arith.constant 0.000000e+00 : f32
    %262 = vector.broadcast %cst_116 : f32 to vector<8x32xf32>
    %263 = arith.maximumf %261, %262 : vector<8x32xf32>
    %264 = arith.addf %263, %245 : vector<8x32xf32>
    %265 = vector.extract_strided_slice %11 {offsets = [2, 0], sizes = [1, 32], strides = [1, 1]} : vector<3x32xf32> to vector<1x32xf32>
    %266 = vector.extract_strided_slice %13 {offsets = [2, 0], sizes = [1, 32], strides = [1, 1]} : vector<3x32xf32> to vector<1x32xf32>
    %cst_117 = arith.constant dense<0.000000e+00> : vector<8xf32>
    %267 = vector.multi_reduction <add>, %264, %cst_117 [1] : vector<8x32xf32> to vector<8xf32>
    %268 = vector.shape_cast %267 : vector<8xf32> to vector<8x1xf32>
    %cst_118 = arith.constant 3.200000e+01 : f32
    %269 = vector.broadcast %cst_118 : f32 to vector<8x1xf32>
    %270 = arith.divf %268, %269 : vector<8x1xf32>
    %271 = vector.broadcast %270 : vector<8x1xf32> to vector<8x32xf32>
    %272 = arith.subf %264, %271 : vector<8x32xf32>
    %273 = arith.mulf %272, %272 : vector<8x32xf32>
    %cst_119 = arith.constant dense<0.000000e+00> : vector<8xf32>
    %274 = vector.multi_reduction <add>, %273, %cst_119 [1] : vector<8x32xf32> to vector<8xf32>
    %275 = vector.shape_cast %274 : vector<8xf32> to vector<8x1xf32>
    %cst_120 = arith.constant 3.200000e+01 : f32
    %276 = vector.broadcast %cst_120 : f32 to vector<8x1xf32>
    %277 = arith.divf %275, %276 : vector<8x1xf32>
    %cst_121 = arith.constant 9.99999974E-6 : f32
    %278 = vector.broadcast %cst_121 : f32 to vector<8x1xf32>
    %279 = arith.addf %277, %278 : vector<8x1xf32>
    %280 = math.rsqrt %279 : vector<8x1xf32>
    %281 = vector.broadcast %280 : vector<8x1xf32> to vector<8x32xf32>
    %282 = arith.mulf %272, %281 : vector<8x32xf32>
    %283 = vector.broadcast %265 : vector<1x32xf32> to vector<8x32xf32>
    %284 = arith.mulf %282, %283 : vector<8x32xf32>
    %285 = vector.broadcast %266 : vector<1x32xf32> to vector<8x32xf32>
    %286 = arith.addf %284, %285 : vector<8x32xf32>
    %c0_122 = arith.constant 0 : index
    %c0_123 = arith.constant 0 : index
    %287 = vector.load %arg25[%c0_122, %c0_123] : memref<8x32xf32, #tpu.memory_space<vmem>>, vector<8x32xf32>
    tpu.vector_store %arg25[%c0_122, %c0_123], %286 {strides = array<i32>} : memref<8x32xf32, #tpu.memory_space<vmem>>, vector<8x32xf32>,
    %c1_i32 = arith.constant 1 : i32
    %288 = arith.cmpi eq, %arg1, %c1_i32 : i32
    %289 = arith.extui %288 : i1 to i32
    %c0_i32_124 = arith.constant 0 : i32
    %290 = arith.cmpi ne, %289, %c0_i32_124 : i32
    scf.if %290 {
      %c0_125 = arith.constant 0 : index
      %c0_126 = arith.constant 0 : index
      %291 = vector.load %arg22[%c0_125, %c0_126] : memref<32x50xf32, #tpu.memory_space<vmem>>, vector<32x50xf32>
      %cst_127 = arith.constant dense<0.000000e+00> : vector<8x50xf32>
      %292 = tpu.matmul %286, %291, %cst_127 {dimension_numbers = #tpu.dot_dimension_numbers<[1], [0], [0], [1], [0, 0, 1, 1], [], []>} : vector<8x32xf32>, vector<32x50xf32>, vector<8x50xf32> -> vector<8x50xf32>
      %c0_128 = arith.constant 0 : index
      %c0_129 = arith.constant 0 : index
      %293 = vector.load %arg23[%c0_128, %c0_129] : memref<1x50xf32, #tpu.memory_space<vmem>>, vector<1x50xf32>
      %294 = vector.broadcast %293 : vector<1x50xf32> to vector<8x50xf32>
      %295 = arith.addf %292, %294 : vector<8x50xf32>
      %c0_130 = arith.constant 0 : index
      %c0_131 = arith.constant 0 : index
      %c0_132 = arith.constant 0 : index
      %296 = vector.load %arg24[%c0_130, %c0_131, %c0_132] : memref<1x8x50xf32, #tpu.memory_space<vmem>>, vector<1x8x50xf32>
      %297 = vector.shape_cast %296 : vector<1x8x50xf32> to vector<8x50xf32>
      %298 = vector.shape_cast %295 : vector<8x50xf32> to vector<1x8x50xf32>
      tpu.vector_store %arg24[%c0_130, %c0_131, %c0_132], %298 {strides = array<i32>} : memref<1x8x50xf32, #tpu.memory_space<vmem>>, vector<1x8x50xf32>,
    } else {
    }
    return
  }
  func.func @transform_0(%arg0: i32, %arg1: i32) -> (i32, i32, i32) {
    %c0_i32 = arith.constant 0 : i32
    %c0_i32_0 = arith.constant 0 : i32
    %c0_i32_1 = arith.constant 0 : i32
    return %arg0, %c0_i32, %c0_i32_0 : i32, i32, i32
  }
  func.func @transform_1(%arg0: i32, %arg1: i32) -> (i32, i32, i32) {
    %c0_i32 = arith.constant 0 : i32
    %c0_i32_0 = arith.constant 0 : i32
    %c0_i32_1 = arith.constant 0 : i32
    return %arg0, %c0_i32, %c0_i32_0 : i32, i32, i32
  }
  func.func @transform_2(%arg0: i32, %arg1: i32) -> (i32, i32, i32) {
    %c0_i32 = arith.constant 0 : i32
    %c0_i32_0 = arith.constant 0 : i32
    %c0_i32_1 = arith.constant 0 : i32
    return %arg0, %c0_i32, %c0_i32_0 : i32, i32, i32
  }
  func.func @transform_3(%arg0: i32, %arg1: i32) -> (i32, i32, i32) {
    %c0_i32 = arith.constant 0 : i32
    %c0_i32_0 = arith.constant 0 : i32
    %c0_i32_1 = arith.constant 0 : i32
    return %arg0, %c0_i32, %c0_i32_0 : i32, i32, i32
  }
  func.func @transform_4(%arg0: i32, %arg1: i32) -> (i32, i32, i32) {
    %c0_i32 = arith.constant 0 : i32
    %c0_i32_0 = arith.constant 0 : i32
    %c0_i32_1 = arith.constant 0 : i32
    return %arg1, %c0_i32, %c0_i32_0 : i32, i32, i32
  }
  func.func @transform_5(%arg0: i32, %arg1: i32) -> (i32, i32, i32) {
    %c0_i32 = arith.constant 0 : i32
    %c0_i32_0 = arith.constant 0 : i32
    %c0_i32_1 = arith.constant 0 : i32
    return %arg1, %c0_i32, %c0_i32_0 : i32, i32, i32
  }
  func.func @transform_6(%arg0: i32, %arg1: i32) -> (i32, i32, i32) {
    %c0_i32 = arith.constant 0 : i32
    %c0_i32_0 = arith.constant 0 : i32
    %c0_i32_1 = arith.constant 0 : i32
    return %arg1, %c0_i32, %c0_i32_0 : i32, i32, i32
  }
  func.func @transform_7(%arg0: i32, %arg1: i32) -> (i32, i32, i32) {
    %c0_i32 = arith.constant 0 : i32
    %c0_i32_0 = arith.constant 0 : i32
    %c0_i32_1 = arith.constant 0 : i32
    return %arg1, %c0_i32, %c0_i32_0 : i32, i32, i32
  }
  func.func @transform_8(%arg0: i32, %arg1: i32) -> (i32, i32, i32) {
    %c0_i32 = arith.constant 0 : i32
    %c0_i32_0 = arith.constant 0 : i32
    %c0_i32_1 = arith.constant 0 : i32
    return %arg1, %c0_i32, %c0_i32_0 : i32, i32, i32
  }
  func.func @transform_9(%arg0: i32, %arg1: i32) -> (i32, i32, i32) {
    %c0_i32 = arith.constant 0 : i32
    %c0_i32_0 = arith.constant 0 : i32
    %c0_i32_1 = arith.constant 0 : i32
    return %arg1, %c0_i32, %c0_i32_0 : i32, i32, i32
  }
  func.func @transform_10(%arg0: i32, %arg1: i32) -> (i32, i32, i32) {
    %c0_i32 = arith.constant 0 : i32
    %c0_i32_0 = arith.constant 0 : i32
    %c0_i32_1 = arith.constant 0 : i32
    return %arg1, %c0_i32, %c0_i32_0 : i32, i32, i32
  }
  func.func @transform_11(%arg0: i32, %arg1: i32) -> (i32, i32, i32) {
    %c0_i32 = arith.constant 0 : i32
    %c0_i32_0 = arith.constant 0 : i32
    %c0_i32_1 = arith.constant 0 : i32
    return %arg1, %c0_i32, %c0_i32_0 : i32, i32, i32
  }
  func.func @transform_12(%arg0: i32, %arg1: i32) -> (i32, i32, i32) {
    %c0_i32 = arith.constant 0 : i32
    %c0_i32_0 = arith.constant 0 : i32
    %c0_i32_1 = arith.constant 0 : i32
    return %arg1, %c0_i32, %c0_i32_0 : i32, i32, i32
  }
  func.func @transform_13(%arg0: i32, %arg1: i32) -> (i32, i32, i32) {
    %c0_i32 = arith.constant 0 : i32
    %c0_i32_0 = arith.constant 0 : i32
    %c0_i32_1 = arith.constant 0 : i32
    return %arg1, %c0_i32, %c0_i32_0 : i32, i32, i32
  }
  func.func @transform_14(%arg0: i32, %arg1: i32) -> (i32, i32, i32) {
    %c0_i32 = arith.constant 0 : i32
    %c0_i32_0 = arith.constant 0 : i32
    %c0_i32_1 = arith.constant 0 : i32
    return %arg1, %c0_i32, %c0_i32_0 : i32, i32, i32
  }
  func.func @transform_15(%arg0: i32, %arg1: i32) -> (i32, i32, i32) {
    %c0_i32 = arith.constant 0 : i32
    %c0_i32_0 = arith.constant 0 : i32
    %c0_i32_1 = arith.constant 0 : i32
    return %arg1, %c0_i32, %c0_i32_0 : i32, i32, i32
  }
  func.func @transform_16(%arg0: i32, %arg1: i32) -> (i32, i32, i32) {
    %c0_i32 = arith.constant 0 : i32
    %c0_i32_0 = arith.constant 0 : i32
    %c0_i32_1 = arith.constant 0 : i32
    return %arg1, %c0_i32, %c0_i32_0 : i32, i32, i32
  }
  func.func @transform_17(%arg0: i32, %arg1: i32) -> (i32, i32, i32) {
    %c0_i32 = arith.constant 0 : i32
    %c0_i32_0 = arith.constant 0 : i32
    %c0_i32_1 = arith.constant 0 : i32
    return %arg1, %c0_i32, %c0_i32_0 : i32, i32, i32
  }
  func.func @transform_18(%arg0: i32, %arg1: i32) -> (i32, i32, i32) {
    %c0_i32 = arith.constant 0 : i32
    %c0_i32_0 = arith.constant 0 : i32
    %c0_i32_1 = arith.constant 0 : i32
    return %arg1, %c0_i32, %c0_i32_0 : i32, i32, i32
  }
  func.func @transform_19(%arg0: i32, %arg1: i32) -> (i32, i32, i32) {
    %c0_i32 = arith.constant 0 : i32
    %c0_i32_0 = arith.constant 0 : i32
    %c0_i32_1 = arith.constant 0 : i32
    return %arg1, %c0_i32, %c0_i32_0 : i32, i32, i32
  }
  func.func @transform_20(%arg0: i32, %arg1: i32) -> (i32, i32) {
    %c0_i32 = arith.constant 0 : i32
    %c0_i32_0 = arith.constant 0 : i32
    %c0_i32_1 = arith.constant 0 : i32
    return %c0_i32, %c0_i32_0 : i32, i32
  }
  func.func @transform_21(%arg0: i32, %arg1: i32) -> (i32, i32) {
    %c0_i32 = arith.constant 0 : i32
    %c0_i32_0 = arith.constant 0 : i32
    %c0_i32_1 = arith.constant 0 : i32
    return %c0_i32, %c0_i32_0 : i32, i32
  }
  func.func @transform_22(%arg0: i32, %arg1: i32) -> (i32, i32, i32) {
    %c0_i32 = arith.constant 0 : i32
    %c0_i32_0 = arith.constant 0 : i32
    %c0_i32_1 = arith.constant 0 : i32
    return %arg0, %c0_i32, %c0_i32_0 : i32, i32, i32
  }
}

</mosaic_0001>

<bundles_post_ra>
// kernel: transformer_decoder.1
= control target key start
LH: loop header
LB: loop body
LE: loop exit
PB: predicated region body
PF: predicated region fallthrough
CT: control target
= control target key end

     0   :  { %s6183_s0 = inlined_call_operand.hbm [shape: f32[2,8,32], index: 0, kind: input, shape index: {}]   ;;  %s6184_s1 = inlined_call_operand.vmem [shape: f32[2,16,32], index: 1, kind: input, shape index: {}]   ;;  %s6185_s2 = inlined_call_operand.vmem [shape: f32[2,8,8], index: 2, kind: input, shape index: {}]   ;;  %s6186_s3 = inlined_call_operand.vmem [shape: f32[2,8,16], index: 3, kind: input, shape index: {}]   ;;  %s6187_s4 = inlined_call_operand.vmem [shape: f32[2,32,96], index: 4, kind: input, shape index: {}]   ;;  %s6188_s5 = inlined_call_operand.hbm [shape: f32[2,1,96], index: 5, kind: input, shape index: {}]   ;;  %s6189_s6 = inlined_call_operand.vmem [shape: f32[2,32,32], index: 6, kind: input, shape index: {}]   ;;  %s6190_s7 = inlined_call_operand.hbm [shape: f32[2,1,32], index: 7, kind: input, shape index: {}]   ;;  %s6191_s8 = inlined_call_operand.vmem [shape: f32[2,32,32], index: 8, kind: input, shape index: {}]   ;;  %s6192_s9 = inlined_call_operand.hbm [shape: f32[2,1,32], index: 9, kind: input, shape index: {}]   ;;  %s6193_s10 = inlined_call_operand.vmem [shape: f32[2,32,64], index: 10, kind: input, shape index: {}]   ;;  %s6194_s11 = inlined_call_operand.hbm [shape: f32[2,1,64], index: 11, kind: input, shape index: {}]   ;;  %s6195_s12 = inlined_call_operand.hbm [shape: f32[2,32,32], index: 12, kind: input, shape index: {}]   ;;  %s6196_s13 = inlined_call_operand.hbm [shape: f32[2,1,32], index: 13, kind: input, shape index: {}]   ;;  %s6197_s14 = inlined_call_operand.hbm [shape: f32[2,32,64], index: 14, kind: input, shape index: {}]   ;;  %s6198_s15 = inlined_call_operand.hbm [shape: f32[2,1,64], index: 15, kind: input, shape index: {}]   ;;  %s6199_s16 = inlined_call_operand.vmem [shape: f32[2,64,32], index: 16, kind: input, shape index: {}]   ;;  %s6200_s17 = inlined_call_operand.hbm [shape: f32[2,1,32], index: 17, kind: input, shape index: {}]   ;;  %s6201_s18 = inlined_call_operand.vmem [shape: f32[2,3,32], index: 18, kind: input, shape index: {}]   ;;  %s6202_s19 = inlined_call_operand.vmem [shape: f32[2,3,32], index: 19, kind: input, shape index: {}]   ;;  %s6203_s20 = inlined_call_operand.hbm [shape: f32[32,50], index: 20, kind: input, shape index: {}]   ;;  %s6204_s21 = inlined_call_operand.hbm [shape: f32[1,50], index: 21, kind: input, shape index: {}]   ;;  %s6205_s22 = inlined_call_operand.hbm [shape: f32[2,8,50], index: 22, kind: output, shape index: {}]  }
   0x1   :  { %6263 = sst [smem:[#allocation52_spill]] %s6183_s0 }
   0x2   :  { %6264 = sst [smem:[#allocation53_spill]] %s6184_s1 }
   0x3   :  { %6265 = sst [smem:[#allocation54_spill]] %s6185_s2 }
   0x4   :  { %6266 = sst [smem:[#allocation55_spill]] %s6186_s3 }
   0x5   :  { %6267 = sst [smem:[#allocation56_spill]] %s6187_s4 }
   0x6   :  { %6268 = sst [smem:[#allocation57_spill]] %s6188_s5 }
   0x7   :  { %6269 = sst [smem:[#allocation58_spill]] %s6189_s6 }
   0x8   :  { %6270 = sst [smem:[#allocation59_spill]] %s6190_s7 }
   0x9   :  { %6271 = sst [smem:[#allocation60_spill]] %s6191_s8 }
   0xa   :  { %6272 = sst [smem:[#allocation61_spill]] %s6192_s9 }
   0xb   :  { %6273 = sst [smem:[#allocation62_spill]] %s6193_s10 }
   0xc   :  { %6274 = sst [smem:[#allocation63_spill]] %s6194_s11 }
   0xd   :  { %6275 = sst [smem:[#allocation64_spill]] %s6195_s12 }
   0xe   :  { %6276 = sst [smem:[#allocation65_spill]] %s6196_s13 }
   0xf   :  { %6277 = sst [smem:[#allocation66_spill]] %s6197_s14 }
  0x10   :  { %6278 = sst [smem:[#allocation67_spill]] %s6198_s15 }
  0x11   :  { %6279 = sst [smem:[#allocation68_spill]] %s6199_s16 }
  0x12   :  { %6280 = sst [smem:[#allocation69_spill]] %s6200_s17 }
  0x13   :  { %6281 = sst [smem:[#allocation70_spill]] %s6201_s18 }
  0x14   :  { %6282 = sst [smem:[#allocation71_spill]] %s6202_s19 }
  0x15   :  { %6283 = sst [smem:[#allocation72_spill]] %s6203_s20 }
  0x16   :  { %6284 = sst [smem:[#allocation73_spill]] %s6204_s21 }
  0x17   :  { %6285 = sst [smem:[#allocation74_spill]] %s6205_s22 }
  0x18   :  { %27 = vsyncpa [#allocation4], 0 }
  0x19   :  { %29 = vsyncpa [#allocation4 + $0x1], 0 }
  0x1a   :  { %30 = vsyncpa [#allocation7], 0 }
  0x1b   :  { %32 = vsyncpa [#allocation7 + $0x1], 0 }
  0x1c   :  { %33 = vsyncpa [#allocation10], 0 }
  0x1d   :  { %35 = vsyncpa [#allocation10 + $0x1], 0 }
  0x1e   :  { %36 = vsyncpa [#allocation13], 0 }
  0x1f   :  { %38 = vsyncpa [#allocation13 + $0x1], 0 }
  0x20   :  { %39 = vsyncpa [#allocation16], 0 }
  0x21   :  { %41 = vsyncpa [#allocation16 + $0x1], 0 }
  0x22   :  { %42 = vsyncpa [#allocation19], 0 }
  0x23   :  { %44 = vsyncpa [#allocation19 + $0x1], 0 }
  0x24   :  { %45 = vsyncpa [#allocation22], 0 }
  0x25   :  { %46 = vsyncpa [#allocation5], 0 }
  0x26   :  { %48 = vsyncpa [#allocation5 + $0x1], 0  ;;  %s5200_s3 = smov 0   ;;  %s5202_s28 = smov 0  }
  0x27   :  { %s5204_s29 = smov 0   ;;  %s5206_s30 = smov 0  }
  0x28   :  { %s5208_s4 = smov 0   ;;  %s5210_s0 = smov 0  }
  0x29   :  { %s5212_s23 = smov 0   ;;  %s5214_s1 = smov 0  }
  0x2a   :  { %s5216_s5 = smov 0   ;;  %s5218_s24 = smov 0  }
  0x2b   :  { %s5220_s6 = smov 0  }
  0x2c LB: > { %6286 = sst [smem:[#allocation33_spill]] %s5012_s28  ;;  %s5254_s25 = sadd.s32 4294967295, %s5048_s6   ;;  %s5048_s6 = sphi %s5220_s6, %s54_s6   ;;  %s5044_s24 = sphi %s5218_s24, %s6402_s24   ;;  %s5040_s5 = sphi %s5216_s5, %s6401_s5   ;;  %s5036_s1 = sphi %s5214_s1, %s6400_s1   ;;  %s5032_s23 = sphi %s5212_s23, %s6399_s23   ;;  %s5028_s0 = sphi %s5210_s0, %s6398_s0   ;;  %s5024_s4 = sphi %s5208_s4, %s6397_s4   ;;  %s5020_s30 = sphi %s5206_s30, %s6396_s30   ;;  %s5016_s29 = sphi %s5204_s29, %s6395_s29   ;;  %s5012_s28 = sphi %s5202_s28, %s6394_s28   ;;  %s5008_s3 = sphi %s5200_s3, %s6393_s3  }
  0x2d   : > { %6287 = sst [smem:[#allocation34_spill]] %s5016_s29  ;;  %p6216_p0 = scmp.eq.s32.totalorder %s5048_s6, 0 }
  0x2e   : > { %6288 = sst [smem:[#allocation35_spill]] %s5020_s30  ;;  %p6215_p1 = scmp.eq.s32.totalorder %s5254_s25, 0 }
  0x2f   : > { %6289 = sst [smem:[#allocation36_spill]] %s5024_s4  ;;  %p210_p2 = scmp.ne.s32.totalorder %s5016_s29, %s5012_s28 }
  0x30   : > { %6290 = sst [smem:[#allocation37_spill]] %s5028_s0  ;;  %p216_p3 = scmp.ne.s32.totalorder %s5012_s28, %s5008_s3 }
  0x31   : > { %6291 = sst [smem:[#allocation38_spill]] %s5032_s23  ;;  %p3817_p4 = scmp.ge.s32.totalorder %s5048_s6, 1 }
  0x32   : > { %6292 = sst [smem:[#allocation39_spill]] %s5036_s1  ;;  %p212_p5 = por %p210_p2, %p6216_p0 }
  0x33   : > { %6293 = sst [smem:[#allocation40_spill]] %s5040_s5  ;;  %p659_p6 = scmp.lt.s32.totalorder %s5048_s6, 5 }
  0x34   : > { %6294 = sst [smem:[#allocation41_spill]] %s5044_s24  ;;  %p5267_p7 = por %p216_p3, %p6215_p1 }
  0x35   : > { %6295 = sst [smem:[#allocation42_spill]] %s5048_s6  ;;  %p5271_p8 = pnand %p3817_p4, %p659_p6 }
  0x36   : > { %s6296_s26 = scalar_select %p5267_p7, 1, 0 }
  0x37   : > { %s6298_s2 = scalar_select %p5271_p8, 1, 0 }
  0x38   : > { %6297 = sst [smem:[#allocation43_spill]] %s6296_s26  ;;  %s5050_s27 = smov [#allocation20]  }
  0x39   : > { %6299 = sst [smem:[#allocation44_spill]] %s6298_s2  ;;  %s671_s22 = sshll.u32 %s5050_s27, 4  ;;  %s672_s22 = int_to_ptr.vmem [resolvable:$true] %s671_s22 }
  0x3a   : > { %p4309_p9 = pneg %p5271_p8  ;;  %p6214_p11 = scmp.lt.s32.totalorder %s5048_s6, 4 }
  0x3b   : > { %s5285_s19 = sand.u32 1, %s5048_s6   ;;  %s6302_s20 = sld [smem:[#allocation72_spill]] }
  0x3c   : > { %p5279_p10 = pnand %p4309_p9, %p6215_p1  ;;  %p5289_p12 = pnand %p6214_p11, %p212_p5 }
  0x3e   : > { %s6300_s3 = scalar_select %p5279_p10, 1, 0 }
  0x3f   : > { %s6301_s18 = scalar_select %p5289_p12, 1, 0 }
  0x40   : > { %p6228_p2 = pneg %p5279_p10 }
  0x41   : > { %s4542_s10 = scalar_lea.hbm %s6302_s20, 512 }
  0x42   : > { %p4543_p13 = scmp.ne.s32.totalorder %s6302_s20, %s4542_s10  ;;  %p4549_p5 = scmp.lt.u32.totalorder %s4542_s10, %s6302_s20 }
  0x44   : > { %p4545_p3 = pnand %p6228_p2, %p4543_p13 }
  0x46   : > { %p4546_p4 = pneg %p4545_p3 }
  0x48   : > { %p4551_p6 = pnand %p4549_p5, %p4546_p4 }
  0x4a   : > { %4554 = shalt.err (!%p4551_p6)
}
  0x4b   : > { %s4555_s28 = scalar_lea.vmem %s672_s22, 512  ;;  %p4563_p0 = scmp.lt.s32.totalorder %s672_s22, %s672_s22 }
  0x4c   : > { %p4556_p9 = scmp.ne.s32.totalorder %s672_s22, %s4555_s28  ;;  %p4564_p7 = scmp.lt.s32.totalorder %s4555_s28, %s4555_s28 }
  0x4e   : > { %p4558_p11 = pnand %p4556_p9, %p6228_p2  ;;  %p4565_p8 = por %p4564_p7, %p4563_p0 }
  0x50   : > { %p4559_p1 = pneg %p4558_p11 }
  0x52   : > { %p4566_p12 = pnand %p4565_p8, %p4559_p1 }
  0x54   : > { %4569 = shalt.err (!%p4566_p12)
}
  0x55   : > { %s6224_s8 = smov 128   ;;  %s6226_s10 = smov 8  }
  0x56   : > { %4312 = dma.hbm_to_vmem [thread:$0]  (!%p5279_p10), %s6302_s20, 512, %s672_s22, [#allocation19], %s6224_s8, %s6224_s8, %s6226_s10  }
  0x57   : > { %s5319_s1 = sand.u32 1, %s5016_s29   ;;  %s5322_s28 = sshll.u32 %s5040_s5, 4 }
  0x58   : > { %s6303_s2 = sld [smem:[#allocation57_spill]]  ;;  %s747_s15 = scalar_lea.vmem [#allocation6], %s5319_s1 }
  0x59   : > { %s754_s13 = sshll.u32 %s747_s15, 4  ;;  %p6304_p1 = scmp.ne.s32.totalorder %s6301_s18, 0  ;;  %s5331_s13 = int_to_ptr.vmem [resolvable:$true] %s754_s13 }
  0x5b   : > { %p5338_p7 = pneg %p6304_p1 }
  0x5d   : > { %s6305_s23 = scalar_select %p5338_p7, 1, 0 }
  0x5e   : > { %s5328_s17 = scalar_lea.hbm %s6303_s2, %s5322_s28  ;;  %s4575_s8 = scalar_lea.hbm %s6303_s2, 32 }
  0x5f   : > { %s4570_s16 = scalar_lea.hbm %s5328_s17, 16  ;;  %p4576_p12 = scmp.lt.u32.totalorder %s5328_s17, %s6303_s2 }
  0x60   : > { %p4571_p0 = scmp.ne.s32.totalorder %s5328_s17, %s4570_s16  ;;  %p4577_p13 = scmp.lt.u32.totalorder %s4575_s8, %s4570_s16 }
  0x61   : > { %p4579_p4 = scmp.lt.u32.totalorder %s4570_s16, %s5328_s17 }
  0x62   : > { %p4573_p8 = pnand %p5338_p7, %p4571_p0  ;;  %p4578_p3 = por %p4577_p13, %p4576_p12 }
  0x64   : > { %p4574_p11 = pneg %p4573_p8  ;;  %p4580_p5 = por %p4579_p4, %p4578_p3 }
  0x66   : > { %p4581_p6 = pnand %p4580_p5, %p4574_p11 }
  0x68   : > { %4584 = shalt.err (!%p4581_p6)
}
  0x69   : > { %s4585_s22 = scalar_lea.vmem %s5331_s13, 16  ;;  %s5053_s26 = smov [#allocation6]  }
  0x6a   : > { %p4586_p9 = scmp.ne.s32.totalorder %s5331_s13, %s4585_s22  ;;  %s4590_s27 = sshll.u32 %s5053_s26, 4  ;;  %s4591_s27 = int_to_ptr.vmem [resolvable:$false] %s4590_s27 }
  0x6b   : > { %s4592_s10 = scalar_lea.vmem %s4591_s27, 32  ;;  %p4593_p2 = scmp.lt.s32.totalorder %s5331_s13, %s4591_s27 }
  0x6c   : > { %p4588_p0 = pnand %p4586_p9, %p5338_p7  ;;  %p4594_p10 = scmp.lt.s32.totalorder %s4592_s10, %s4585_s22 }
  0x6e   : > { %p4589_p8 = pneg %p4588_p0  ;;  %p4595_p12 = por %p4594_p10, %p4593_p2 }
  0x70   : > { %p4596_p13 = pnand %p4595_p12, %p4589_p8 }
  0x72   : > { %4599 = shalt.err (!%p4596_p13)
}
  0x73   : > { %s6306_s8 = scalar_lea.sflag [#allocation7], %s5285_s19  ;;  %s6307_s9 = sld [smem:[#allocation61_spill]] }
  0x74   : > { %4322 = dma.hbm_to_vmem [thread:$0]  (!%p6304_p1), %s5328_s17, 16, %s5331_s13, %s6306_s8  }
  0x75   : > { %s797_s22 = scalar_lea.vmem [#allocation9], %s5319_s1  ;;  %s3827_s10 = sshll.u32 %s5319_s1, 5 }
  0x76   : > { %s804_s27 = sshll.u32 %s797_s22, 4  ;;  %s6232_s2 = scalar_lea.sflag [#allocation10], %s5285_s19  ;;  %s5370_s27 = int_to_ptr.vmem [resolvable:$true] %s804_s27 }
  0x79   : > { %s5367_s26 = scalar_lea.hbm %s6307_s9, %s5322_s28  ;;  %s4605_s8 = scalar_lea.hbm %s6307_s9, 32 }
  0x7a   : > { %s4600_s20 = scalar_lea.hbm %s5367_s26, 16  ;;  %p4606_p3 = scmp.lt.u32.totalorder %s5367_s26, %s6307_s9 }
  0x7b   : > { %p4601_p10 = scmp.ne.s32.totalorder %s5367_s26, %s4600_s20  ;;  %p4607_p4 = scmp.lt.u32.totalorder %s4605_s8, %s4600_s20 }
  0x7c   : > { %p4609_p6 = scmp.lt.u32.totalorder %s4600_s20, %s5367_s26 }
  0x7d   : > { %p4603_p2 = pnand %p4601_p10, %p5338_p7  ;;  %p4608_p5 = por %p4607_p4, %p4606_p3 }
  0x7f   : > { %p4604_p11 = pneg %p4603_p2  ;;  %p4610_p9 = por %p4609_p6, %p4608_p5 }
  0x81   : > { %p4611_p0 = pnand %p4610_p9, %p4604_p11 }
  0x83   : > { %4614 = shalt.err (!%p4611_p0)
}
  0x84   : > { %s4615_s22 = scalar_lea.vmem %s5370_s27, 16  ;;  %s5054_s13 = smov [#allocation9]  }
  0x85   : > { %p4616_p8 = scmp.ne.s32.totalorder %s5370_s27, %s4615_s22  ;;  %s4620_s17 = sshll.u32 %s5054_s13, 4  ;;  %s4621_s17 = int_to_ptr.vmem [resolvable:$false] %s4620_s17 }
  0x86   : > { %s4622_s16 = scalar_lea.vmem %s4621_s17, 32  ;;  %p4623_p10 = scmp.lt.s32.totalorder %s5370_s27, %s4621_s17 }
  0x87   : > { %p4618_p12 = pnand %p4616_p8, %p5338_p7  ;;  %p4624_p2 = scmp.lt.s32.totalorder %s4622_s16, %s4615_s22 }
  0x89   : > { %p4619_p13 = pneg %p4618_p12  ;;  %p4625_p3 = por %p4624_p2, %p4623_p10 }
  0x8b   : > { %p4626_p4 = pnand %p4625_p3, %p4619_p13 }
  0x8d   : > { %4629 = shalt.err (!%p4626_p4)
}
  0x8e   : > { %4328 = dma.hbm_to_vmem [thread:$0]  (!%p6304_p1), %s5367_s26, 16, %s5370_s27, %s6232_s2  }
  0x8f   : > { %s3910_s20 = sshll.u32 %s5040_s5, 9  ;;  %s6308_s12 = sld [smem:[#allocation64_spill]] }
  0x90   : > { %s840_s13 = scalar_lea.vmem [#allocation12], %s3827_s10  ;;  %s6235_s16 = scalar_lea.sflag [#allocation13], %s5285_s19 }
  0x91   : > { %s847_s17 = sshll.u32 %s840_s13, 4  ;;  %s5407_s17 = int_to_ptr.vmem [resolvable:$true] %s847_s17 }
  0x95   : > { %s5403_s22 = scalar_lea.hbm %s6308_s12, %s3910_s20  ;;  %s4635_s8 = scalar_lea.hbm %s6308_s12, 1024 }
  0x96   : > { %s4630_s9 = scalar_lea.hbm %s5403_s22, 512  ;;  %p4636_p9 = scmp.lt.u32.totalorder %s5403_s22, %s6308_s12 }
  0x97   : > { %p4631_p11 = scmp.ne.s32.totalorder %s5403_s22, %s4630_s9  ;;  %p4637_p0 = scmp.lt.u32.totalorder %s4635_s8, %s4630_s9 }
  0x98   : > { %p4639_p12 = scmp.lt.u32.totalorder %s4630_s9, %s5403_s22 }
  0x99   : > { %p4633_p5 = pnand %p4631_p11, %p5338_p7  ;;  %p4638_p8 = por %p4637_p0, %p4636_p9 }
  0x9b   : > { %p4634_p6 = pneg %p4633_p5  ;;  %p4640_p13 = por %p4639_p12, %p4638_p8 }
  0x9d   : > { %p4641_p10 = pnand %p4640_p13, %p4634_p6 }
  0x9f   : > { %4644 = shalt.err (!%p4641_p10)
}
  0xa0   : > { %s4645_s13 = scalar_lea.vmem %s5407_s17, 512  ;;  %s5055_s26 = smov [#allocation12]  }
  0xa1   : > { %p4646_p2 = scmp.ne.s32.totalorder %s5407_s17, %s4645_s13  ;;  %s4650_s27 = sshll.u32 %s5055_s26, 4  ;;  %s4651_s27 = int_to_ptr.vmem [resolvable:$false] %s4650_s27 }
  0xa2   : > { %s4652_s2 = scalar_lea.vmem %s4651_s27, 1024  ;;  %p4653_p11 = scmp.lt.s32.totalorder %s5407_s17, %s4651_s27 }
  0xa3   : > { %p4648_p3 = pnand %p4646_p2, %p5338_p7  ;;  %p4654_p5 = scmp.lt.s32.totalorder %s4652_s2, %s4645_s13 }
  0xa5   : > { %p4649_p4 = pneg %p4648_p3  ;;  %p4655_p9 = por %p4654_p5, %p4653_p11 }
  0xa7   : > { %p4656_p0 = pnand %p4655_p9, %p4649_p4 }
  0xa9   : > { %4659 = shalt.err (!%p4656_p0)
}
  0xaa   : > { %s6309_s9 = smov 8   ;;  %s6310_s8 = smov 128  }
  0xab   : > { %4334 = dma.hbm_to_vmem [thread:$0]  (!%p6304_p1), %s5403_s22, 512, %s5407_s17, %s6235_s16, %s6310_s8, %s6310_s8, %s6309_s9  }
  0xac   : > { %s6311_s14 = sld [smem:[#allocation66_spill]]  ;;  %s878_s27 = scalar_lea.vmem [#allocation15], %s3827_s10 }
  0xad   : > { %s885_s2 = sshll.u32 %s878_s27, 4  ;;  %s5056_s12 = smov [#allocation21]   ;;  %s5445_s2 = int_to_ptr.vmem [resolvable:$true] %s885_s2 }
  0xae   : > { %s5447_s11 = sshll.u32 %s5056_s12, 4  ;;  %s6239_s7 = scalar_lea.sflag [#allocation16], %s5285_s19  ;;  %s686_s11 = int_to_ptr.vmem [resolvable:$true] %s5447_s11 }
  0xb2   : > { %s5441_s26 = scalar_lea.hbm %s6311_s14, %s3910_s20  ;;  %s4665_s15 = scalar_lea.hbm %s6311_s14, 1024 }
  0xb3   : > { %s4660_s22 = scalar_lea.hbm %s5441_s26, 512  ;;  %p4666_p13 = scmp.lt.u32.totalorder %s5441_s26, %s6311_s14 }
  0xb4   : > { %p4661_p6 = scmp.ne.s32.totalorder %s5441_s26, %s4660_s22  ;;  %p4667_p10 = scmp.lt.u32.totalorder %s4665_s15, %s4660_s22 }
  0xb5   : > { %p4669_p3 = scmp.lt.u32.totalorder %s4660_s22, %s5441_s26 }
  0xb6   : > { %p4663_p8 = pnand %p4661_p6, %p5338_p7  ;;  %p4668_p2 = por %p4667_p10, %p4666_p13 }
  0xb8   : > { %p4664_p12 = pneg %p4663_p8  ;;  %p4670_p4 = por %p4669_p3, %p4668_p2 }
  0xba   : > { %p4671_p11 = pnand %p4670_p4, %p4664_p12 }
  0xbc   : > { %4674 = shalt.err (!%p4671_p11)
}
  0xbd   : > { %s4675_s12 = scalar_lea.vmem %s5445_s2, 512  ;;  %s5057_s10 = smov [#allocation15]  }
  0xbe   : > { %p4676_p5 = scmp.ne.s32.totalorder %s5445_s2, %s4675_s12  ;;  %s4680_s27 = sshll.u32 %s5057_s10, 4  ;;  %s4681_s27 = int_to_ptr.vmem [resolvable:$false] %s4680_s27 }
  0xbf   : > { %s4682_s16 = scalar_lea.vmem %s4681_s27, 1024  ;;  %p4683_p6 = scmp.lt.s32.totalorder %s5445_s2, %s4681_s27 }
  0xc0   : > { %p4678_p9 = pnand %p4676_p5, %p5338_p7  ;;  %p4684_p8 = scmp.lt.s32.totalorder %s4682_s16, %s4675_s12 }
  0xc2   : > { %p4679_p0 = pneg %p4678_p9  ;;  %p4685_p13 = por %p4684_p8, %p4683_p6 }
  0xc4   : > { %p4686_p10 = pnand %p4685_p13, %p4679_p0 }
  0xc6   : > { %4689 = shalt.err (!%p4686_p10)
}
  0xc7   : > { %4340 = dma.hbm_to_vmem [thread:$0]  (!%p6304_p1), %s5441_s26, 512, %s5445_s2, %s6239_s7, %s6310_s8, %s6310_s8, %s6309_s9  }
  0xc8   : > { %s6312_s21 = sld [smem:[#allocation73_spill]]  ;;  %p6313_p2 = scmp.ne.s32.totalorder %s6300_s3, 0 }
  0xca   : > { %p6314_p3 = pneg %p6313_p2 }
  0xce   : > { %s4690_s17 = scalar_lea.hbm %s6312_s21, 16 }
  0xcf   : > { %p4691_p12 = scmp.ne.s32.totalorder %s6312_s21, %s4690_s17  ;;  %p4697_p5 = scmp.lt.u32.totalorder %s4690_s17, %s6312_s21 }
  0xd1   : > { %p4693_p4 = pnand %p4691_p12, %p6314_p3 }
  0xd3   : > { %p4694_p11 = pneg %p4693_p4 }
  0xd5   : > { %p4699_p9 = pnand %p4697_p5, %p4694_p11 }
  0xd7   : > { %4702 = shalt.err (!%p4699_p9)
}
  0xd8   : > { %s4703_s9 = scalar_lea.vmem %s686_s11, 16  ;;  %p6315_p6 = pmov %p6314_p3 }
  0xd9   : > { %p4704_p0 = scmp.ne.s32.totalorder %s686_s11, %s4703_s9  ;;  %s4710_s8 = scalar_lea.vmem %s686_s11, 32 }
  0xda   : > { %p4711_p10 = scmp.lt.s32.totalorder %s686_s11, %s686_s11  ;;  %p4712_p1 = scmp.lt.s32.totalorder %s4710_s8, %s4703_s9 }
  0xdb   : > { %p4706_p8 = pnand %p4704_p0, %p6315_p6 }
  0xdc   : > { %p4713_p7 = por %p4712_p1, %p4711_p10 }
  0xdd   : > { %p4707_p13 = pneg %p4706_p8 }
  0xdf   : > { %p4714_p3 = pnand %p4713_p7, %p4707_p13 }
  0xe1   : > { %4717 = shalt.err (!%p4714_p3)
}
  0xe2   : > { %4315 = dma.hbm_to_vmem [thread:$0]  (!%p6313_p2), %s6312_s21, 16, %s686_s11, [#allocation22]  }
  0xe3   : > { %s3816_s3 = sadd.s32 4294967294, %s5048_s6   ;;  %s63_s27 = sadd.s32 1, %s5040_s5 }
  0xe4   : > { %s66_s16 = sadd.s32 1, %s5044_s24  ;;  %p64_p1 = scmp.ge.s32.totalorder %s63_s27, 2 }
  0xe5   : > { %s73_s22 = sadd.s32 1, %s5028_s0  ;;  %p80_p7 = scmp.ne.s32.totalorder %s5028_s0, %s5024_s4 }
  0xe6   : > { %p86_p12 = scmp.ne.s32.totalorder %s5024_s4, %s5020_s30  ;;  %s6404_s27 = smov (%p64_p1, %s63_s27), 0 }
  0xe7   : > { %6316 = sst [smem:[#allocation45_spill]] %s6404_s27  ;;  %s6406_s16 = smov (!%p64_p1, %s66_s16), %s5044_s24 }
  0xe8   : > { %p6317_p2 = scmp.eq.s32.totalorder %s5048_s6, 0  ;;  %p6319_p11 = scmp.eq.s32.totalorder %s5254_s25, 0 }
  0xe9   : > { %p68_p9 = scmp.ge.s32.totalorder %s6406_s16, 2  ;;  %s200_s17 = ssub.s32 %s5040_s5, %s6404_s27 }
  0xea   : > { %p5513_p4 = por %p6317_p2, %p80_p7  ;;  %p5522_p5 = por %p6319_p11, %p86_p12 }
  0xeb   : > { %p201_p0 = scmp.eq.s32.totalorder %s200_s17, 0  ;;  %s203_s15 = sadd.s32 1, %s5016_s29 }
  0xec   : > { %s6320_s20 = scalar_select %p5522_p5, 1, 0 }
  0xed   : > { %s6408_s16 = smov (%p68_p9, %s6406_s16), 0  ;;  %p646_p6 = scmp.eq.s32.totalorder %s5254_s25, 3 }
  0xee   : > { %6321 = sst [smem:[#allocation46_spill]] %s6408_s16  ;;  %s70_s12 = ssub.s32 %s5044_s24, %s6408_s16 }
  0xef   : > { %s5532_s13 = scalar_select %p201_p0, %s5016_s29, %s203_s15  }
  0xf0   : > { %p71_p8 = scmp.eq.s32.totalorder %s70_s12, 0  ;;  %p652_p13 = scmp.eq.s32.totalorder %s3816_s3, 3 }
  0xf1   : > { %6322 = sst [smem:[#allocation47_spill]] %s5532_s13  ;;  %p5540_p10 = por %p646_p6, %p80_p7 }
  0xf2   : > { %s696_s9 = sand.u32 1, %s5028_s0   ;;  %p5551_p3 = por %p652_p13, %p86_p12 }
  0xf3   : > { %s6323_s10 = scalar_select %p5540_p10, 1, 0 }
  0xf4   : > { %s5546_s8 = scalar_select %p71_p8, %s5028_s0, %s73_s22  }
  0xf5   : > { %6324 = sst [smem:[#allocation48_spill]] %s6323_s10  ;;  %s3821_s2 = sshll.u32 %s696_s9, 3 }
  0xf6   : > { %6325 = sst [smem:[#allocation49_spill]] %s5546_s8  ;;  %s3822_s17 = sshll.u32 %s5044_s24, 7 }
  0xf7   : > { %s6326_s26 = scalar_select %p5551_p3, 1, 0 }
  0xf8   : > { %s6328_s14 = sld [smem:[#allocation52_spill]]  ;;  %s700_s3 = scalar_lea.vmem [#allocation3], %s3821_s2 }
  0xf9   : > { %6327 = sst [smem:[#allocation50_spill]] %s6326_s26  ;;  %s707_s21 = sshll.u32 %s700_s3, 4  ;;  %s5569_s21 = int_to_ptr.vmem [resolvable:$true] %s707_s21 }
  0xfa   : > { %p6329_p1 = scmp.lt.s32.totalorder %s5048_s6, 4  ;;  %s697_s27 = scalar_lea.sflag [#allocation4], %s696_s9 }
  0xfc   : > { %p5565_p7 = pnand %p6329_p1, %p5513_p4 }
  0xfe   : > { %s5559_s12 = scalar_lea.hbm %s6328_s14, %s3822_s17  ;;  %s6331_s17 = sld [smem:[#allocation59_spill]] }
  0xff   : > { %s4718_s24 = scalar_lea.hbm %s5559_s12, 128  ;;  %p4720_p2 = pneg %p5565_p7 }
 0x100   : > { %p4719_p12 = scmp.ne.s32.totalorder %s5559_s12, %s4718_s24  ;;  %s4723_s3 = scalar_lea.hbm %s6328_s14, 256 }
 0x101   : > { %p4724_p9 = scmp.lt.u32.totalorder %s5559_s12, %s6328_s14  ;;  %p4725_p0 = scmp.lt.u32.totalorder %s4723_s3, %s4718_s24 }
 0x102   : > { %p4721_p4 = pnand %p4720_p2, %p4719_p12  ;;  %p4727_p8 = scmp.lt.u32.totalorder %s4718_s24, %s5559_s12 }
 0x103   : > { %p4726_p6 = por %p4725_p0, %p4724_p9 }
 0x104   : > { %s5575_s15 = scalar_lea.hbm %s6331_s17, %s5322_s28  ;;  %p4722_p11 = pneg %p4721_p4 }
 0x105   : > { %p4728_p13 = por %p4727_p8, %p4726_p6 }
 0x107   : > { %p4729_p1 = pnand %p4728_p13, %p4722_p11 }
 0x109   : > { %4732 = shalt.err (!%p4729_p1)
}
 0x10a   : > { %s4733_s16 = scalar_lea.vmem %s5569_s21, 128  ;;  %s5058_s9 = smov [#allocation3]  }
 0x10b   : > { %p4734_p12 = scmp.ne.s32.totalorder %s5569_s21, %s4733_s16  ;;  %s4738_s7 = sshll.u32 %s5058_s9, 4  ;;  %s4739_s7 = int_to_ptr.vmem [resolvable:$false] %s4738_s7 }
 0x10c   : > { %s4740_s5 = scalar_lea.vmem %s4739_s7, 256  ;;  %p4741_p10 = scmp.lt.s32.totalorder %s5569_s21, %s4739_s7 }
 0x10d   : > { %p4736_p4 = pnand %p4734_p12, %p4720_p2  ;;  %p4742_p9 = scmp.lt.s32.totalorder %s4740_s5, %s4733_s16 }
 0x10f   : > { %p4737_p3 = pneg %p4736_p4  ;;  %p4743_p0 = por %p4742_p9, %p4741_p10 }
 0x111   : > { %p4744_p6 = pnand %p4743_p0, %p4737_p3 }
 0x113   : > { %4747 = shalt.err (!%p4744_p6)
}
 0x114   : > { %4319 = dma.hbm_to_vmem [thread:$0]  (!%p5565_p7), %s5559_s12, 128, %s5569_s21, %s697_s27  }
 0x115   : > { %s772_s24 = scalar_lea.vmem [#allocation8], %s5319_s1  ;;  %s6332_s3 = sld [smem:[#allocation63_spill]] }
 0x116   : > { %s779_s8 = sshll.u32 %s772_s24, 4  ;;  %s4748_s7 = scalar_lea.hbm %s5575_s15, 16  ;;  %s780_s8 = int_to_ptr.vmem [resolvable:$true] %s779_s8 }
 0x117   : > { %p4749_p10 = scmp.ne.s32.totalorder %s5575_s15, %s4748_s7  ;;  %p6334_p3 = scmp.ne.s32.totalorder %s6305_s23, 0 }
 0x118   : > { %s4753_s14 = scalar_lea.hbm %s6331_s17, 32  ;;  %p4754_p7 = scmp.lt.u32.totalorder %s5575_s15, %s6331_s17 }
 0x119   : > { %p4751_p2 = pnand %p4749_p10, %p6334_p3  ;;  %p4755_p8 = scmp.lt.u32.totalorder %s4753_s14, %s4748_s7 }
 0x11a   : > { %p4757_p1 = scmp.lt.u32.totalorder %s4748_s7, %s5575_s15 }
 0x11b   : > { %s6333_s16 = smov %s6332_s3  ;;  %s5607_s9 = scalar_lea.hbm %s6332_s3, %s5322_s28 }
 0x11c   : > { %p4752_p11 = pneg %p4751_p2  ;;  %p4756_p13 = por %p4755_p8, %p4754_p7 }
 0x11e   : > { %p4758_p12 = por %p4757_p1, %p4756_p13 }
 0x120   : > { %p4759_p4 = pnand %p4758_p12, %p4752_p11 }
 0x122   : > { %4762 = shalt.err (!%p4759_p4)
}
 0x123   : > { %s4763_s21 = scalar_lea.vmem %s780_s8, 16  ;;  %s5059_s27 = smov [#allocation8]  }
 0x124   : > { %p4764_p9 = scmp.ne.s32.totalorder %s780_s8, %s4763_s21  ;;  %s4768_s12 = sshll.u32 %s5059_s27, 4  ;;  %s4769_s12 = int_to_ptr.vmem [resolvable:$false] %s4768_s12 }
 0x125   : > { %s4770_s24 = scalar_lea.vmem %s4769_s12, 32  ;;  %p4771_p10 = scmp.lt.s32.totalorder %s780_s8, %s4769_s12 }
 0x126   : > { %p4766_p0 = pnand %p4764_p9, %p6334_p3  ;;  %p4772_p2 = scmp.lt.s32.totalorder %s4770_s24, %s4763_s21 }
 0x128   : > { %p4767_p6 = pneg %p4766_p0  ;;  %p4773_p5 = por %p4772_p2, %p4771_p10 }
 0x12a   : > { %p4774_p7 = pnand %p4773_p5, %p4767_p6 }
 0x12c   : > { %4777 = shalt.err (!%p4774_p7)
}
 0x12d   : > { %p6335_p8 = scmp.ne.s32.totalorder %s6301_s18, 0  ;;  %s6336_s14 = scalar_lea.sflag [#allocation7], %s5285_s19 }
 0x12e   : > { %s822_s0 = scalar_lea.vmem [#allocation11], %s5319_s1  ;;  %s6337_s3 = sld [smem:[#allocation65_spill]] }
 0x12f   : > { %4325 = dma.hbm_to_vmem [thread:$0]  (!%p6335_p8), %s5575_s15, 16, %s780_s8, %s6336_s14  }
 0x130   : > { %s829_s13 = sshll.u32 %s822_s0, 4  ;;  %s4778_s5 = scalar_lea.hbm %s5607_s9, 16  ;;  %s830_s13 = int_to_ptr.vmem [resolvable:$true] %s829_s13 }
 0x131   : > { %p4779_p5 = scmp.ne.s32.totalorder %s5607_s9, %s4778_s5  ;;  %s4783_s12 = scalar_lea.hbm %s6333_s16, 32 }
 0x132   : > { %p4784_p1 = scmp.lt.u32.totalorder %s5607_s9, %s6333_s16  ;;  %p4785_p12 = scmp.lt.u32.totalorder %s4783_s12, %s4778_s5 }
 0x133   : > { %p4781_p11 = pnand %p4779_p5, %p6334_p3  ;;  %p4787_p9 = scmp.lt.u32.totalorder %s4778_s5, %s5607_s9 }
 0x134   : > { %s6338_s7 = smov %s6337_s3  ;;  %s5633_s22 = scalar_lea.hbm %s6337_s3, %s5322_s28 }
 0x135   : > { %p4782_p13 = pneg %p4781_p11  ;;  %p4786_p4 = por %p4785_p12, %p4784_p1 }
 0x137   : > { %p4788_p0 = por %p4787_p9, %p4786_p4 }
 0x139   : > { %p4789_p6 = pnand %p4788_p0, %p4782_p13 }
 0x13b   : > { %4792 = shalt.err (!%p4789_p6)
}
 0x13c   : > { %s4793_s15 = scalar_lea.vmem %s830_s13, 16  ;;  %s5060_s8 = smov [#allocation11]  }
 0x13d   : > { %p4794_p10 = scmp.ne.s32.totalorder %s830_s13, %s4793_s15  ;;  %s4798_s14 = sshll.u32 %s5060_s8, 4  ;;  %s4799_s14 = int_to_ptr.vmem [resolvable:$false] %s4798_s14 }
 0x13e   : > { %s4800_s0 = scalar_lea.vmem %s4799_s14, 32  ;;  %p4801_p5 = scmp.lt.s32.totalorder %s830_s13, %s4799_s14 }
 0x13f   : > { %p4796_p2 = pnand %p4794_p10, %p6334_p3  ;;  %p4802_p11 = scmp.lt.s32.totalorder %s4800_s0, %s4793_s15 }
 0x141   : > { %p4797_p7 = pneg %p4796_p2  ;;  %p4803_p8 = por %p4802_p11, %p4801_p5 }
 0x143   : > { %p4804_p1 = pnand %p4803_p8, %p4797_p7 }
 0x145   : > { %4807 = shalt.err (!%p4804_p1)
}
 0x146   : > { %p6339_p12 = scmp.ne.s32.totalorder %s6301_s18, 0  ;;  %s6340_s17 = scalar_lea.sflag [#allocation10], %s5285_s19 }
 0x147   : > { %s860_s11 = scalar_lea.vmem [#allocation14], %s5319_s1  ;;  %s6341_s21 = sld [smem:[#allocation67_spill]] }
 0x148   : > { %4331 = dma.hbm_to_vmem [thread:$0]  (!%p6339_p12), %s5607_s9, 16, %s830_s13, %s6340_s17  }
 0x149   : > { %s867_s2 = sshll.u32 %s860_s11, 4  ;;  %s4808_s12 = scalar_lea.hbm %s5633_s22, 16  ;;  %s868_s2 = int_to_ptr.vmem [resolvable:$true] %s867_s2 }
 0x14a   : > { %p4809_p8 = scmp.ne.s32.totalorder %s5633_s22, %s4808_s12  ;;  %s4813_s8 = scalar_lea.hbm %s6338_s7, 32 }
 0x14b   : > { %p4814_p9 = scmp.lt.u32.totalorder %s5633_s22, %s6338_s7  ;;  %p4815_p0 = scmp.lt.u32.totalorder %s4813_s8, %s4808_s12 }
 0x14c   : > { %p4811_p13 = pnand %p4809_p8, %p6334_p3  ;;  %p4817_p10 = scmp.lt.u32.totalorder %s4808_s12, %s5633_s22 }
 0x14d   : > { %s5659_s27 = scalar_lea.hbm %s6341_s21, %s5322_s28  ;;  %p4816_p6 = por %p4815_p0, %p4814_p9 }
 0x14e   : > { %p4812_p4 = pneg %p4811_p13 }
 0x14f   : > { %p4818_p2 = por %p4817_p10, %p4816_p6 }
 0x151   : > { %p4819_p7 = pnand %p4818_p2, %p4812_p4 }
 0x153   : > { %4822 = shalt.err (!%p4819_p7)
}
 0x154   : > { %s4823_s9 = scalar_lea.vmem %s868_s2, 16  ;;  %s5061_s13 = smov [#allocation14]  }
 0x155   : > { %p4824_p5 = scmp.ne.s32.totalorder %s868_s2, %s4823_s9  ;;  %s4828_s17 = sshll.u32 %s5061_s13, 4  ;;  %s4829_s17 = int_to_ptr.vmem [resolvable:$false] %s4828_s17 }
 0x156   : > { %s4830_s11 = scalar_lea.vmem %s4829_s17, 32  ;;  %p4831_p8 = scmp.lt.s32.totalorder %s868_s2, %s4829_s17 }
 0x157   : > { %p4826_p11 = pnand %p4824_p5, %p6334_p3  ;;  %p4832_p13 = scmp.lt.s32.totalorder %s4830_s11, %s4823_s9 }
 0x159   : > { %p4827_p1 = pneg %p4826_p11  ;;  %p4833_p12 = por %p4832_p13, %p4831_p8 }
 0x15b   : > { %p4834_p0 = pnand %p4833_p12, %p4827_p1 }
 0x15d   : > { %4837 = shalt.err (!%p4834_p0)
}
 0x15e   : > { %p6342_p9 = scmp.ne.s32.totalorder %s6301_s18, 0  ;;  %s6343_s3 = scalar_lea.sflag [#allocation13], %s5285_s19 }
 0x15f   : > { %s898_s5 = scalar_lea.vmem [#allocation17], %s5319_s1  ;;  %s4838_s24 = scalar_lea.hbm %s5659_s27, 16 }
 0x160   : > { %4337 = dma.hbm_to_vmem [thread:$0]  (!%p6342_p9), %s5633_s22, 16, %s868_s2, %s6343_s3  }
 0x161   : > { %s905_s12 = sshll.u32 %s898_s5, 4  ;;  %p4839_p4 = scmp.ne.s32.totalorder %s5659_s27, %s4838_s24  ;;  %s906_s12 = int_to_ptr.vmem [resolvable:$true] %s905_s12 }
 0x162   : > { %s4843_s14 = scalar_lea.hbm %s6341_s21, 32  ;;  %p4844_p10 = scmp.lt.u32.totalorder %s5659_s27, %s6341_s21 }
 0x163   : > { %p4841_p12 = pnand %p4839_p4, %p6334_p3  ;;  %p4845_p2 = scmp.lt.u32.totalorder %s4843_s14, %s4838_s24 }
 0x164   : > { %p4847_p5 = scmp.lt.u32.totalorder %s4838_s24, %s5659_s27 }
 0x165   : > { %p4842_p6 = pneg %p4841_p12  ;;  %p4846_p7 = por %p4845_p2, %p4844_p10 }
 0x167   : > { %p4848_p11 = por %p4847_p5, %p4846_p7 }
 0x169   : > { %p4849_p1 = pnand %p4848_p11, %p4842_p6 }
 0x16b   : > { %4852 = shalt.err (!%p4849_p1)
}
 0x16c   : > { %s4853_s22 = scalar_lea.vmem %s906_s12, 16  ;;  %s5062_s2 = smov [#allocation17]  }
 0x16d   : > { %p4854_p8 = scmp.ne.s32.totalorder %s906_s12, %s4853_s22  ;;  %s4858_s13 = sshll.u32 %s5062_s2, 4  ;;  %s4859_s13 = int_to_ptr.vmem [resolvable:$false] %s4858_s13 }
 0x16e   : > { %s4860_s17 = scalar_lea.vmem %s4859_s13, 32  ;;  %p4861_p4 = scmp.lt.s32.totalorder %s906_s12, %s4859_s13 }
 0x16f   : > { %p4856_p13 = pnand %p4854_p8, %p6334_p3  ;;  %p4862_p12 = scmp.lt.s32.totalorder %s4860_s17, %s4853_s22 }
 0x171   : > { %p4857_p0 = pneg %p4856_p13  ;;  %p4863_p9 = por %p4862_p12, %p4861_p4 }
 0x173   : > { %p4864_p2 = pnand %p4863_p9, %p4857_p0 }
 0x175   : > { %4867 = shalt.err (!%p4864_p2)
}
 0x176   : > { %p6344_p10 = scmp.ne.s32.totalorder %s6301_s18, 0  ;;  %s6345_s11 = scalar_lea.sflag [#allocation16], %s5285_s19 }
 0x177   : > { %s6346_s24 = sld [smem:[#allocation69_spill]]  ;;  %s923_s14 = scalar_lea.vmem [#allocation18], %s5319_s1 }
 0x178   : > { %4343 = dma.hbm_to_vmem [thread:$0]  (!%p6344_p10), %s5659_s27, 16, %s906_s12, %s6345_s11  }
 0x179   : > { %s930_s0 = sshll.u32 %s923_s14, 4  ;;  %s921_s9 = scalar_lea.sflag [#allocation19], %s5285_s19  ;;  %s931_s0 = int_to_ptr.vmem [resolvable:$true] %s930_s0 }
 0x17d   : > { %s6347_s15 = smov %s6346_s24  ;;  %s5704_s8 = scalar_lea.hbm %s6346_s24, %s5322_s28 }
 0x17e   : > { %s4868_s22 = scalar_lea.hbm %s5704_s8, 16  ;;  %s4873_s12 = scalar_lea.hbm %s6347_s15, 32 }
 0x17f   : > { %p4869_p9 = scmp.ne.s32.totalorder %s5704_s8, %s4868_s22  ;;  %p4874_p5 = scmp.lt.u32.totalorder %s5704_s8, %s6347_s15 }
 0x180   : > { %p4875_p11 = scmp.lt.u32.totalorder %s4873_s12, %s4868_s22  ;;  %p4877_p8 = scmp.lt.u32.totalorder %s4868_s22, %s5704_s8 }
 0x181   : > { %p4871_p6 = pnand %p4869_p9, %p6334_p3 }
 0x182   : > { %p4876_p1 = por %p4875_p11, %p4874_p5 }
 0x183   : > { %p4872_p7 = pneg %p4871_p6 }
 0x184   : > { %p4878_p13 = por %p4877_p8, %p4876_p1 }
 0x186   : > { %p4879_p0 = pnand %p4878_p13, %p4872_p7 }
 0x188   : > { %4882 = shalt.err (!%p4879_p0)
}
 0x189   : > { %s4883_s19 = scalar_lea.vmem %s931_s0, 16  ;;  %s5063_s1 = smov [#allocation18]  }
 0x18a   : > { %p4884_p4 = scmp.ne.s32.totalorder %s931_s0, %s4883_s19  ;;  %s4888_s17 = sshll.u32 %s5063_s1, 4  ;;  %s4889_s17 = int_to_ptr.vmem [resolvable:$false] %s4888_s17 }
 0x18b   : > { %s4890_s11 = scalar_lea.vmem %s4889_s17, 32  ;;  %p4891_p9 = scmp.lt.s32.totalorder %s931_s0, %s4889_s17 }
 0x18c   : > { %p4886_p12 = pnand %p4884_p4, %p6334_p3  ;;  %p4892_p6 = scmp.lt.s32.totalorder %s4890_s11, %s4883_s19 }
 0x18e   : > { %p4887_p2 = pneg %p4886_p12  ;;  %p4893_p10 = por %p4892_p6, %p4891_p9 }
 0x190   : > { %p4894_p5 = pnand %p4893_p10, %p4887_p2 }
 0x192   : > { %4897 = shalt.err (!%p4894_p5)
}
 0x193   : > { %p6348_p11 = scmp.ne.s32.totalorder %s6301_s18, 0  ;;  %s6349_s3 = sld [smem:[#allocation44_spill]] }
 0x195   : > { %4346 = dma.hbm_to_vmem [thread:$0]  (!%p6348_p11), %s5704_s8, 16, %s931_s0, %s921_s9  }
 0x199   : > { %p6350_p7 = scmp.ne.s32.totalorder %s6349_s3, 0 }
 0x19b   : > { %953 = sbr.rel (%p6350_p7) target bundleno = 6042 (0x179a), region = 108 }
 0x1a2   : > { %s5728_s23 = sand.u32 1, %s5024_s4   ;;  %p6351_p3 = scmp.ne.s32.totalorder %s6320_s20, 0 }
 0x1a3   : > { %s6249_s5 = sshll.u32 %s5728_s23, 3  ;;  %s956_s24 = scalar_lea.sflag [#allocation4], %s5728_s23 }
 0x1a4   : > { %s5734_s14 = scalar_lea.vmem [#allocation3], %s6249_s5 }
 0x1a5   : > { %4971 = dma.done.wait (%p6351_p3), %s956_s24, 128  }
 0x1a6   : > { %4973 = vsyncadd (%p6351_p3), %s956_s24, 4294967168  ;;  %s6352_s18 = sld [smem:[#allocation33_spill]]  ;;  %s6353_s8 = sld [smem:[#allocation43_spill]] }
 0x1a7   : > { %s964_s0 = sand.u32 1, %s5254_s25  }
 0x1a8   : > { %s965_s22 = scalar_lea.sflag [#allocation7], %s964_s0 }
 0x1ac   : > { %s5742_s9 = sand.u32 1, %s6352_s18   ;;  %p6354_p10 = scmp.ne.s32.totalorder %s6353_s8, 0 }
 0x1ae   : > { %4975 = dma.done.wait (%p6354_p10), %s965_s22, 32  }
 0x1af   : > { %4977 = vsyncadd (%p6354_p10), %s965_s22, 4294967264  ;;  %s981_s20 = scalar_lea.sflag [#allocation10], %s964_s0 }
 0x1b0   : > { %4979 = dma.done.wait (%p6354_p10), %s981_s20, 32  }
 0x1b1   : > { %4981 = vsyncadd (%p6354_p10), %s981_s20, 4294967264  ;;  %s3838_s13 = sshll.u32 %s5742_s9, 5  ;;  %s997_s19 = scalar_lea.sflag [#allocation13], %s964_s0 }
 0x1b2   : > { %s5757_s1 = scalar_lea.vmem [#allocation12], %s3838_s13 }
 0x1b3   : > { %4983 = dma.done.wait (%p6354_p10), %s997_s19, 528  }
 0x1b4   : > { %4985 = vsyncadd (%p6354_p10), %s997_s19, 4294966768  ;;  %s1014_s11 = scalar_lea.sflag [#allocation16], %s964_s0  ;;  %s5764_s3 = scalar_lea.vmem [#allocation15], %s3838_s13 }
 0x1b5   : > { %6355 = sst [smem:[#allocation51_spill]] %s5764_s3 }
 0x1b6   : > { %4987 = dma.done.wait (%p6354_p10), %s1014_s11, 528  }
 0x1b7   : > { %4989 = vsyncadd (%p6354_p10), %s1014_s11, 4294966768  ;;  %s1031_s18 = scalar_lea.sflag [#allocation19], %s964_s0 }
 0x1b8   : > { %4991 = dma.done.wait (%p6354_p10), %s1031_s18, 16  }
 0x1b9   : > { %4993 = vsyncadd (%p6354_p10), %s1031_s18, 4294967280  ;;  %p6356_p1 = scmp.eq.s32.totalorder %s5254_s25, 0 }
 0x1bb   : > { %4995 = dma.done.wait (%p6356_p1), [#allocation19], 512   ;;  %p6357_p8 = pmov %p6356_p1 }
 0x1bc   : > { %p6358_p13 = pmov %p6356_p1 }
 0x1bd   : > { %4997 = vsyncadd (%p6357_p8), [#allocation19], 4294966784 }
 0x1be   : > { %4999 = dma.done.wait (%p6358_p13), [#allocation22], 16   ;;  %p6359_p0 = pmov %p6356_p1 }
 0x1bf   : > { %s6360_s20 = sld [smem:[#allocation39_spill]]  ;;  %s6361_s0 = sld [smem:[#allocation38_spill]] }
 0x1c0   : > { %5001 = vsyncadd (%p6359_p0), [#allocation22], 4294967280  ;;  %s6362_s22 = sld [smem:[#allocation53_spill]]  ;;  %s6363_s25 = sld [smem:[#allocation54_spill]] }
 0x1c1   : > { %s6364_s5 = sld [smem:[#allocation55_spill]]  ;;  %s6365_s4 = sld [smem:[#allocation56_spill]] }
 0x1c2   : > { %s6366_s11 = sld [smem:[#allocation58_spill]]  ;;  %s6367_s12 = sld [smem:[#allocation60_spill]] }
 0x1c3   : > { %s6368_s2 = sld [smem:[#allocation62_spill]]  ;;  %s6372_s30 = sshll.u32 %s5728_s23, 3 }
 0x1c5   : > { %p1186_p4 = scmp.lt.s32.totalorder %s6360_s20, 1  ;;  %p1199_p12 = scmp.lt.s32.totalorder %s6361_s0, 1 }
 0x1c6   : > { %p3859_p2 = scmp.ne.s32.totalorder %s6361_s0, 0 }
 0x1c7   : > { %s6410_s20 = smov (!%p1186_p4, %s6360_s20), 1  ;;  %v1236_v0 = vld [vmem:[%s5734_s14] sm:$0xff] (!%p3859_p2)  ;;  %vm1237_vm0 = vcmask (!%p3859_p2), 261120  }
 0x1c8   : > { %s1200_s8 = scalar_select %p1199_p12, %s6361_s0, 1 }
 0x1c9   : > { %s3912_s13 = sshll.u32 %s6410_s20, 4  ;;  %s3845_s19 = sshll.u32 %s6410_s20, 3  ;;  %1238 = vst.msk [vmem:[#allocation2] sm:$0xff] (!%p3859_p2), %vm1237_vm0, %v1236_v0 }
 0x1ca   : > { %s5791_s24 = scalar_lea.vmem %s6362_s22, %s3912_s13  ;;  %s5796_s28 = scalar_lea.vmem %s6363_s25, %s3845_s19 }
 0x1cb   : > { %s5801_s7 = scalar_lea.vmem %s6364_s5, %s3845_s19  ;;  %s3913_s15 = sshll.u32 %s1200_s8, 5 }
 0x1cc   : > { %s1203_s20 = scalar_lea.vmem %s6365_s4, %s3913_s15  ;;  %s5809_s22 = scalar_lea.vmem %s6366_s11, %s3913_s15 }
 0x1cd   : > { %s5814_s17 = scalar_lea.vmem %s6367_s12, %s3913_s15  ;;  %s5819_s5 = scalar_lea.vmem %s6368_s2, %s3913_s15 }
 0x1ce   : > { %s3917_s27 = sshll.u32 %s1200_s8, 6  ;;  %s3857_s19 = sshll.u32 %s1200_s8, 2 }
 0x1cf   : > { %s6369_s4 = sld [smem:[#allocation68_spill]]  ;;  %s6370_s11 = sld [smem:[#allocation70_spill]] }
 0x1d0   : > { %s6371_s12 = sld [smem:[#allocation71_spill]]  ;;  %s5838_s15 = scalar_lea.vmem [#allocation23], %s6372_s30 }
 0x1d1   : > { %1235 = sbr.rel (%p3859_p2) target bundleno = 472 (0x1d8), region = 160 }
 0x1d5   : > { %s5824_s21 = scalar_lea.vmem %s6369_s4, %s3917_s27  ;;  %s5829_s10 = scalar_lea.vmem %s6370_s11, %s3857_s19 }
 0x1d6   : > { %s5834_s3 = scalar_lea.vmem %s6371_s12, %s3857_s19 }
 0x1d8 PF: > { %v1246_v1 = vld [vmem:[%s1203_s20] sm:$0xff]  ;;  %v1247_v2 = vld [vmem:[%s1203_s20 + $0x8] sm:$0xff]  ;;  %v1248_v3 = vld [vmem:[%s1203_s20 + $0x10] sm:$0xff]  ;;  %v5064_v4 = vmov 0.0|0.0   ;;  %vm5065_vm1 = vmmov 0   ;;  %v5066_v7 = vmov 0.0  }
 0x1d9   : > { %4195 = vmatprep.subr.bf16.mxu1 %v5064_v4  ;;  %v4196_v5 = vpack.c.bf16 %v1247_v2, %v1246_v1  ;;  %v1249_v6 = vld [vmem:[%s1203_s20 + $0x18] sm:$0xff]  ;;  %4011 = vmatprep.mubr.msk.f32.mxu1 %vm5065_vm1, %v5066_v7  ;;  %v5849_v9 = vld [vmem:[#allocation2] sm:$0xff]  ;;  %vm1257_vm2 = vcmask 261120   ;;  %s6373_s6 = scalar_lea.vmem [#allocation6], %s5742_s9  ;;  %s5067_s14 = smov 120   ;;  %vm1334_vm3 = vcmask 64512  }
 0x1da   : > { %4024 = vmatprep.subr.mxu0 %v5066_v7  ;;  %4026 = vmatprep.mubr.msk.f32.mxu0 %vm5065_vm1, %v5066_v7  ;;  %v4199_v8 = vpack.c.bf16 %v1249_v6, %v1248_v3  ;;  %v3860_v10 = vld [vmem:[%s6373_s6] ss:$0 sm:$0xff]  ;;  %s5068_s0 = smov 96   ;;  %s5069_s8 = smov 80   ;;  %vm2012_vm4 = vcmask 130048   ;;  %vm2014_vm5 = vcmask 195584   ;;  %vm5979_vm6 = vmpackc.low %vm1334_vm3, %vm1334_vm3 }
 0x1db   : > { %4197 = vmatpush3.bf16.msra.mxu1 %v4196_v5  ;;  %s5070_s20 = smov 88   ;;  %s5071_s25 = smov 72   ;;  %v1242_v22 = vld [vmem:[%s5796_s28] sm:$0xff]  ;;  %vm3217_vm7 = vcmask 523264  }
 0x1dc   : > { %4198 = vmatprep.subr.bf16.mxu1 %v5064_v4  ;;  %s5072_s2 = smov 112   ;;  %s5073_s27 = smov 104  }
 0x1dd   : > { %s5074_s28 = smov 56   ;;  %s5075_s19 = smov 64  }
 0x1de   : > { %s5076_s16 = smov 48   ;;  %s5077_s4 = smov 40  }
 0x1df   : > { %4200 = vmatpush3.bf16.msra.mxu1 %v4199_v8  ;;  %s5078_s29 = smov 8   ;;  %s5079_s26 = smov 16  }
 0x1e0   : > { %4014 = vmatprep.subr.mxu1 %v5066_v7  ;;  %s5080_s11 = smov 24  }
 0x1e2   : > { %4012 = vmatmul.mubr.msk.f32.vlgmr.msra.gmra.mrb[0].mxu1 %vm1257_vm2, %v5849_v9 }
 0x1e3   : > { %4016 = vmatprep.mubr.msk.f32.mxu1 %vm5065_vm1, %v5066_v7 }
 0x2b5   : > { %v1327_v11 = vpop.f32.mrb[0].mxu1 }
 0x2b6   : > { %v5858_v12 = vadd.f32 %v3860_v10, %v1327_v11  ;;  %v4013_v13 = vpop.f32.mrb[1].mxu1 }
 0x2b8   : > { %1498 = vrot.lane.b32.xlu1 %v5858_v12, %s5067_s14  ;;  %1332 = vrot.lane.b32.xlu0 %v5858_v12, %s5068_s0 }
 0x2bc   : > { %1667 = vrot.lane.b32.xlu1 %v5858_v12, %s5069_s8  ;;  %1500 = vrot.lane.b32.xlu0 %v5858_v12, %s5070_s20 }
 0x2c0   : > { %1834 = vrot.lane.b32.xlu1 %v5858_v12, %s5071_s25  ;;  %1665 = vrot.lane.b32.xlu0 %v5858_v12, %s5072_s2 }
 0x2c4   : > { %1832 = vrot.lane.b32.xlu0 %v5858_v12, %s5073_s27 }
 0x32a   : > { %v1499_v14 = vpop.permute.xlu1 %1498  ;;  %v1333_v15 = vpop.permute.xlu0 %1332 }
 0x32b   : > { %4015 = vmatpush3.xpose.msk.msra.mxu1 %vm1334_vm3, %v1333_v15 }
 0x32c   : > { %4019 = vmatprep.subr.mxu1 %v5066_v7 }
 0x32e   : > { %4017 = vmatmul.mubr.msk.f32.vlgmr.msra.gmra.mrb[2].mxu1 %vm1334_vm3, %v5858_v12  ;;  %v1501_v16 = vpop.permute.xlu0 %1500  ;;  %v1668_v17 = vpop.permute.xlu1 %1667 }
 0x32f   : > { %4025 = vmatpush3.xpose.msk.msra.mxu0 %vm1334_vm3, %v1501_v16  ;;  %4021 = vmatprep.mubr.msk.f32.mxu1 %vm5065_vm1, %v5066_v7 }
 0x330   : > { %4034 = vmatprep.subr.mxu0 %v5066_v7 }
 0x332   : > { %4027 = vmatmul.mubr.msk.f32.vlgmr.msra.gmra.mrb[0].mxu0 %vm1334_vm3, %v1499_v14  ;;  %v1666_v18 = vpop.permute.xlu0 %1665  ;;  %v1835_v19 = vpop.permute.xlu1 %1834 }
 0x333   : > { %4035 = vmatpush3.xpose.msk.msra.mxu0 %vm1334_vm3, %v1668_v17  ;;  %4036 = vmatprep.mubr.msk.f32.mxu0 %vm5065_vm1, %v5066_v7  ;;  %v2016_v17 = vld [vmem:[%s5809_s22] sm:$0xff] }
 0x334   : > { %4044 = vmatprep.subr.mxu0 %v5066_v7 }
 0x336   : > { %4037 = vmatmul.mubr.msk.f32.vlgmr.msra.gmra.mrb[2].mxu0 %vm1334_vm3, %v1666_v18  ;;  %v1833_v20 = vpop.permute.xlu0 %1832  ;;  %v2017_v18 = vld [vmem:[%s5809_s22 + $0x8] sm:$0xff] }
 0x337   : > { %4045 = vmatpush3.xpose.msk.msra.mxu0 %vm1334_vm3, %v1835_v19  ;;  %4046 = vmatprep.mubr.msk.f32.mxu0 %vm5065_vm1, %v5066_v7  ;;  %v4202_v19 = vpack.c.bf16 %v2017_v18, %v2016_v17 }
 0x338   : > { %4201 = vmatprep.subr.bf16.mxu0 %v5064_v4 }
 0x33a   : > { %4047 = vmatmul.mubr.msk.f32.vlgmr.msra.gmra.mrb[4].mxu0 %vm1334_vm3, %v1833_v20 }
 0x33b   : > { %4062 = vmatprep.mubr.msk.f32.mxu0 %vm5065_vm1, %v5066_v7  ;;  %4203 = vmatpush3.bf16.msra.mxu0 %v4202_v19 }
 0x33c   : > { %4204 = vmatprep.subr.bf16.mxu0 %v5064_v4 }
 0x401   : > { %v1405_v21 = vpop.f32.mrb[2].mxu1 }
 0x402   : > { %v1409_v23 = vmul.f32 0.17677669, %v1405_v21  ;;  %v4018_v24 = vpop.f32.mrb[3].mxu1 }
 0x403   : > { %v2018_v24 = vld [vmem:[%s5809_s22 + $0x10] sm:$0xff] }
 0x404   : > { %v1410_v25 = vadd.f32 %v1409_v23, %v1242_v22 }
 0x405   : > { %v1572_v26 = vpop.f32.mrb[0].mxu0 }
 0x406   : > { %v1576_v27 = vmul.f32 0.17677669, %v1572_v26  ;;  %v4028_v28 = vpop.f32.mrb[1].mxu0  ;;  %v1411_v29 = vsel %vm1334_vm3, %v1410_v25, -inf }
 0x407   : > { %1412 = vmax.xlane.f32.xlu1 %v1411_v29 }
 0x408   : > { %v1577_v30 = vadd.f32 %v1576_v27, %v1242_v22 }
 0x409   : > { %v1739_v31 = vpop.f32.mrb[2].mxu0 }
 0x40a   : > { %v1743_v32 = vmul.f32 0.17677669, %v1739_v31  ;;  %v4038_v33 = vpop.f32.mrb[3].mxu0  ;;  %v1578_v34 = vsel %vm1334_vm3, %v1577_v30, -inf }
 0x40b   : > { %1579 = vmax.xlane.f32.xlu0 %v1578_v34 }
 0x40c   : > { %v1744_v35 = vadd.f32 %v1743_v32, %v1242_v22 }
 0x40d   : > { %v1906_v36 = vpop.f32.mrb[4].mxu0 }
 0x40e   : > { %v1910_v37 = vmul.f32 0.17677669, %v1906_v36  ;;  %v4048_v38 = vpop.f32.mrb[5].mxu0  ;;  %v1745_v39 = vsel %vm1334_vm3, %v1744_v35, -inf }
 0x40f   : > { %1746 = vmax.xlane.f32.xlu0 %v1745_v39 }
 0x410   : > { %v1911_v40 = vadd.f32 %v1910_v37, %v1242_v22 }
 0x412   : > { %v1912_v41 = vsel %vm1334_vm3, %v1911_v40, -inf }
 0x413   : > { %1913 = vmax.xlane.f32.xlu1 %v1912_v41 }
 0x424   : > { %1589 = vrot.lane.b32.xlu1 %v5858_v12, %s5074_s28 }
 0x494   : > { %v1413_v42 = vpop.xlane.xlu1 %1412 }
 0x495   : > { %v1414_v43 = vsub.f32 %v1410_v25, %v1413_v42  ;;  %v2019_v25 = vld [vmem:[%s5809_s22 + $0x18] sm:$0xff]  ;;  %s6374_s22 = scalar_lea.vmem [#allocation8], %s5742_s9 }
 0x496   : > { %v4205_v26 = vpack.c.bf16 %v2019_v25, %v2018_v24  ;;  %v3874_v37 = vld [vmem:[%s6374_s22] ss:$0 sm:$0xff] }
 0x497   : > { %v1415_v44 = vmul.f32 1.442695, %v1414_v43  ;;  %v2209_v43 = vld [vmem:[%s5819_s5] sm:$0xff] }
 0x498   : > { %v1580_v45 = vpop.xlane.xlu0 %1579  ;;  %4206 = vmatpush3.bf16.msra.mxu0 %v4205_v26 }
 0x499   : > { %4504 = vpow2.f32 %v1415_v44  ;;  %v1581_v46 = vsub.f32 %v1577_v30, %v1580_v45  ;;  %v2210_v44 = vld [vmem:[%s5819_s5 + $0x8] sm:$0xff] }
 0x49a   : > { %v4213_v45 = vpack.c.bf16 %v2210_v44, %v2209_v43 }
 0x49b   : > { %v1582_v47 = vmul.f32 1.442695, %v1581_v46 }
 0x49c   : > { %v1747_v57 = vpop.xlane.xlu0 %1746  ;;  %4214 = vmatprep.subr.bf16.mxu0 %v4213_v45 }
 0x49d   : > { %4506 = vpow2.f32 %v1582_v47  ;;  %v1748_v58 = vsub.f32 %v1744_v35, %v1747_v57 }
 0x49f   : > { %v1749_v59 = vmul.f32 1.442695, %v1748_v58  ;;  %v2127_v58 = vld [vmem:[%s5814_s17 + $0x10] sm:$0xff] }
 0x4a0   : > { %v1914_v48 = vpop.xlane.xlu1 %1913 }
 0x4a1   : > { %v1915_v49 = vsub.f32 %v1911_v40, %v1914_v48 }
 0x4a3   : > { %v4505_v50 = vpop.eup %4504  ;;  %v1916_v51 = vmul.f32 1.442695, %v1915_v49 }
 0x4a4   : > { %v1417_v52 = vsel %vm1334_vm3, %v4505_v50, 0.0  ;;  %v1590_v62 = vpop.permute.xlu1 %1589 }
 0x4a5   : > { %4508 = vpow2.f32 %v1916_v51  ;;  %1418 = vadd.xlane.f32.xlu0 %v1417_v52  ;;  %v2212_v51 = vld [vmem:[%s5819_s5 + $0x18] sm:$0xff] }
 0x4a6   : > { %4510 = vpow2.f32 %v1749_v59  ;;  %v2128_v59 = vld [vmem:[%s5814_s17 + $0x18] sm:$0xff] }
 0x4a7   : > { %v4507_v53 = vpop.eup %4506 }
 0x4a8   : > { %v1584_v54 = vsel %vm1334_vm3, %v4507_v53, 0.0 }
 0x4a9   : > { %1585 = vadd.xlane.f32.xlu1 %v1584_v54  ;;  %v1241_v54 = vld [vmem:[%s5791_s24 + $0x8] sm:$0xff] }
 0x4af   : > { %v4509_v55 = vpop.eup %4508 }
 0x4b0   : > { %v1918_v56 = vsel %vm1334_vm3, %v4509_v55, 0.0  ;;  %v4511_v60 = vpop.eup %4510 }
 0x4b1   : > { %1919 = vadd.xlane.f32.xlu1 %v1918_v56  ;;  %v1751_v61 = vsel %vm1334_vm3, %v4511_v60, 0.0  ;;  %v2126_v56 = vld [vmem:[%s5814_s17 + $0x8] sm:$0xff] }
 0x4bb   : > { %1422 = vrot.lane.b32.xlu0 %v5858_v12, %s5075_s19 }
 0x4c2   : > { %1756 = vrot.lane.b32.xlu1 %v5858_v12, %s5076_s16 }
 0x4da   : > { %1752 = vadd.xlane.f32.xlu0 %v1751_v61 }
 0x4f0   : > { %1923 = vrot.lane.b32.xlu0 %v5858_v12, %s5077_s4 }
 0x532   : > { %v1419_v63 = vpop.xlane.xlu0 %1418 }
 0x533   : > { %4512 = vrcp.f32 %v1419_v63  ;;  %v2115_v63 = vlaneseq }
 0x536   : > { %v1423_v0 = vpop.permute.xlu0 %1422  ;;  %v1586_v1 = vpop.xlane.xlu1 %1585 }
 0x537   : > { %4514 = vrcp.f32 %v1586_v1  ;;  %4020 = vmatpush3.msra.mxu1 %v1423_v0  ;;  %v5958_v1 = vshrl.u32 %v2115_v63, 7 }
 0x538   : > { %4029 = vmatprep.subr.mxu1 %v5066_v7 }
 0x53d   : > { %v4513_v2 = vpop.eup %4512 }
 0x53e   : > { %v1421_v3 = vmul.f32 %v4513_v2, %v4505_v50  ;;  %v1920_v5 = vpop.xlane.xlu1 %1919  ;;  %v2117_v2 = vsub.s32 0, %v5958_v1 }
 0x540   : > { %4022 = vmatmul.mubr.msk.f32.vlgmr.msra.gmra.mrb[4].mxu1 %vm1334_vm3, %v1421_v3  ;;  %v5962_v3 = vld [vmem:[%s5829_s10] sm:$0x7]  ;;  %s6375_s10 = scalar_lea.vmem [#allocation11], %s5742_s9 }
 0x541   : > { %v4515_v6 = vpop.eup %4514  ;;  %4030 = vmatpush3.msra.mxu1 %v1590_v62  ;;  %4031 = vmatprep.mubr.msk.f32.mxu1 %vm5065_vm1, %v5066_v7 }
 0x542   : > { %v1588_v8 = vmul.f32 %v4515_v6, %v4507_v53  ;;  %v1757_v10 = vpop.permute.xlu1 %1756  ;;  %4039 = vmatprep.subr.mxu1 %v5066_v7  ;;  %v1240_v53 = vld [vmem:[%s5791_s24] sm:$0xff]  ;;  %v2118_v6 = vrot.slane %v5962_v3, %v2117_v2  ;;  %s6381_s24 = scalar_lea.vmem [#allocation17], %s5742_s9 }
 0x544   : > { %4032 = vmatmul.mubr.msk.f32.vlgmr.msra.gmra.mrb[6].mxu1 %vm1334_vm3, %v1588_v8 }
 0x545   : > { %4040 = vmatpush3.msra.mxu1 %v1757_v10  ;;  %4041 = vmatprep.mubr.msk.f32.mxu1 %vm5065_vm1, %v5066_v7 }
 0x546   : > { %4049 = vmatprep.subr.mxu1 %v5066_v7 }
 0x567   : > { %v1753_v11 = vpop.xlane.xlu0 %1752 }
 0x568   : > { %4516 = vrcp.f32 %v1753_v11 }
 0x569   : > { %4518 = vrcp.f32 %v1920_v5  ;;  %v5965_v5 = vld [vmem:[%s5834_s3] sm:$0x7]  ;;  %s6378_s3 = scalar_lea.vmem [#allocation9], %s5742_s9 }
 0x56a   : > { %v2123_v11 = vrot.slane %v5965_v5, %v2117_v2  ;;  %v3876_v25 = vld [vmem:[%s6378_s3] ss:$0 sm:$0xff] }
 0x56b   : > { %v1924_v15 = vpop.permute.xlu0 %1923 }
 0x572   : > { %v4517_v12 = vpop.eup %4516 }
 0x573   : > { %v1755_v13 = vmul.f32 %v4517_v12, %v4511_v60  ;;  %v4519_v14 = vpop.eup %4518  ;;  %v4211_v60 = vpack.c.bf16 %v2128_v59, %v2127_v58 }
 0x574   : > { %v1922_v16 = vmul.f32 %v4519_v14, %v4509_v55  ;;  %v2125_v55 = vld [vmem:[%s5814_s17] sm:$0xff]  ;;  %s6382_s17 = scalar_lea.vmem [#allocation18], %s5742_s9 }
 0x575   : > { %4042 = vmatmul.mubr.msk.f32.vlgmr.msra.gmra.mrb[8].mxu1 %vm1334_vm3, %v1755_v13  ;;  %v4208_v57 = vpack.c.bf16 %v2126_v56, %v2125_v55  ;;  %v3878_v14 = vld [vmem:[%s6375_s10] ss:$0 sm:$0xff] }
 0x576   : > { %4050 = vmatpush3.msra.mxu1 %v1924_v15  ;;  %4051 = vmatprep.mubr.msk.f32.mxu1 %vm5065_vm1, %v5066_v7 }
 0x577   : > { %4207 = vmatprep.subr.bf16.mxu1 %v5064_v4 }
 0x579   : > { %4052 = vmatmul.mubr.msk.f32.vlgmr.msra.gmra.mrb[10].mxu1 %vm1334_vm3, %v1922_v16 }
 0x57a   : > { %4073 = vmatprep.mubr.msk.f32.mxu1 %vm5065_vm1, %v5066_v7  ;;  %4209 = vmatpush3.bf16.msra.mxu1 %v4208_v57 }
 0x57b   : > { %4210 = vmatprep.subr.bf16.mxu1 %v5064_v4 }
 0x57e   : > { %4212 = vmatpush3.bf16.msra.mxu1 %v4211_v60 }
 0x57f   : > { %4221 = vmatprep.subr.bf16.mxu1 %v5064_v4 }
 0x613   : > { %v1494_v20 = vpop.f32.mrb[4].mxu1 }
 0x614   : > { %v4023_v21 = vpop.f32.mrb[5].mxu1 }
 0x617   : > { %v1661_v22 = vpop.f32.mrb[6].mxu1 }
 0x618   : > { %2000 = vrot.lane.b32.xlu1 %v1661_v22, %s5078_s29  ;;  %v4033_v23 = vpop.f32.mrb[7].mxu1 }
 0x648   : > { %v1828_v27 = vpop.f32.mrb[8].mxu1 }
 0x649   : > { %2004 = vrot.lane.b32.xlu0 %v1828_v27, %s5079_s26  ;;  %v4043_v28 = vpop.f32.mrb[9].mxu1 }
 0x64c   : > { %v1995_v29 = vpop.f32.mrb[10].mxu1 }
 0x64d   : > { %2008 = vrot.lane.b32.xlu1 %v1995_v29, %s5080_s11  ;;  %v4053_v30 = vpop.f32.mrb[11].mxu1 }
 0x68a   : > { %v2001_v31 = vpop.permute.xlu1 %2000 }
 0x68b   : > { %v2011_v33 = vsel %vm1334_vm3, %v1494_v20, %v2001_v31 }
 0x6bb   : > { %v2005_v32 = vpop.permute.xlu0 %2004 }
 0x6bc   : > { %v2013_v34 = vsel %vm2012_vm4, %v2011_v33, %v2005_v32  ;;  %v6007_v32 = vld [vmem:[%s5801_s7] sm:$0xff]  ;;  %s6379_s7 = sld [smem:[#allocation51_spill]] }
 0x6bf   : > { %v2009_v35 = vpop.permute.xlu1 %2008 }
 0x6c0   : > { %v2015_v36 = vsel %vm2014_vm5, %v2013_v34, %v2009_v35 }
 0x6c1   : > { %4063 = vmatmul.mubr.msk.f32.vlgmr.msra.gmra.mrb[6].mxu0 %vm1257_vm2, %v2015_v36 }
 0x6c2   : > { %4216 = vmatpush3.bf16.msra.mxu0 %v4213_v45  ;;  %4084 = vmatprep.mubr.msk.f32.mxu0 %vm1257_vm2, %v1240_v53 }
 0x794   : > { %v2096_v38 = vpop.f32.mrb[6].mxu0 }
 0x795   : > { %v2097_v39 = vadd.f32 %v3874_v37, %v2096_v38  ;;  %v4064_v40 = vpop.f32.mrb[7].mxu0 }
 0x797   : > { %v2100_v41 = vadd.f32 %v2097_v39, %v5849_v9  ;;  %v2211_v9 = vld [vmem:[%s5819_s5 + $0x10] sm:$0xff] }
 0x798   : > { %v4217_v52 = vpack.c.bf16 %v2212_v51, %v2211_v9 }
 0x799   : > { %v2101_v42 = vsel %vm1257_vm2, %v2100_v41, 0.0 }
 0x79a   : > { %2102 = vadd.xlane.f32.xlu0 %v2101_v42  ;;  %4218 = vmatprep.subr.bf16.mxu0 %v4217_v52 }
 0x79b   : > { %4220 = vmatpush3.bf16.msra.mxu0 %v4217_v52 }
 0x79c   : > { %4225 = vmatprep.subr.bf16.mxu0 %v5064_v4 }
 0x79e   : > { %4085 = vmatmul.mubr.msk.f32.vlgmr.msra.gmra.mrb[8].mxu0 %vm1257_vm2, %v1241_v54 }
 0x79f   : > { %4098 = vmatprep.mubr.msk.f32.mxu0 %vm5065_vm1, %v5066_v7 }
 0x827   : > { %v2103_v46 = vpop.xlane.xlu0 %2102 }
 0x828   : > { %v2105_v47 = vmul.f32 0.03125, %v2103_v46 }
 0x82a   : > { %v2106_v48 = vsub.f32 %v2100_v41, %v2105_v47 }
 0x82c   : > { %v2107_v49 = vmul.f32 %v2106_v48, %v2106_v48 }
 0x82e   : > { %v2108_v50 = vsel %vm1257_vm2, %v2107_v49, 0.0 }
 0x82f   : > { %2109 = vadd.xlane.f32.xlu1 %v2108_v50 }
 0x871   : > { %v4086_v15 = vpop.f32.mrb[8].mxu0 }
 0x872   : > { %v2298_v16 = vadd.f32 %v4086_v15, %v3878_v14  ;;  %v2292_v17 = vpop.f32.mrb[9].mxu0 }
 0x873   : > { %v2293_v18 = vadd.f32 %v3878_v14, %v2292_v17 }
 0x875   : > { %v5983_v20 = vpack.i.bf16 %v2298_v16, %v2293_v18  ;;  %v4222_v21 = vpack.c.bf16 %v2298_v16, %v2293_v18 }
 0x877   : > { %4470 = vrot.lane.b32.xlu0 %v5983_v20, %s5067_s14 }
 0x8bc   : > { %v2110_v61 = vpop.xlane.xlu1 %2109 }
 0x8bd   : > { %v2111_v62 = vmul.f32 0.03125, %v2110_v61 }
 0x8bf   : > { %v2112_v0 = vadd.f32 1e-05, %v2111_v62 }
 0x8c1   : > { %4520 = vrsqrt.f32 %v2112_v0 }
 0x8cb   : > { %v4521_v8 = vpop.eup %4520 }
 0x8cc   : > { %v2114_v10 = vmul.f32 %v4521_v8, %v2106_v48 }
 0x8ce   : > { %v2119_v12 = vmul.f32 %v2118_v6, %v2114_v10 }
 0x8d0   : > { %v5969_v13 = vadd.f32 %v2123_v11, %v2119_v12 }
 0x8d2   : > { %4074 = vmatmul.mubr.msk.f32.vlgmr.msra.gmra.mrb[12].mxu1 %vm1257_vm2, %v5969_v13 }
 0x8d3   : > { %4091 = vmatprep.mubr.msk.f32.mxu1 %vm5065_vm1, %v5066_v7  ;;  %4224 = vmatpush3.bf16.xpose.msk.msra.mxu1 %vm5979_vm6, %v4222_v21 }
 0x8d4   : > { %4228 = vmatprep.subr.bf16.mxu1 %v5064_v4 }
 0x8e9   : > { %v4471_v22 = vpop.permute.xlu0 %4470 }
 0x8ea   : > { %v4473_v23 = vunpack.i.h.bf16 %v4471_v22  ;;  %v4472_v24 = vunpack.i.l.bf16 %v4471_v22 }
 0x8ec   : > { %v4229_v27 = vpack.c.bf16 %v4473_v23, %v4472_v24 }
 0x9a5   : > { %v2205_v26 = vpop.f32.mrb[12].mxu1 }
 0x9a6   : > { %v5992_v28 = vadd.f32 %v3876_v25, %v2205_v26  ;;  %v4075_v29 = vpop.f32.mrb[13].mxu1 }
 0x9a8   : > { %2472 = vrot.lane.b32.xlu1 %v5992_v28, %s5067_s14  ;;  %4092 = vmatmul.mubr.msk.f32.vlgmr.msra.gmra.mrb[14].mxu1 %vm1334_vm3, %v5992_v28 }
 0x9a9   : > { %4231 = vmatpush3.bf16.xpose.msk.msra.mxu1 %vm5979_vm6, %v4229_v27  ;;  %4105 = vmatprep.mubr.msk.f32.mxu1 %vm5065_vm1, %v5066_v7 }
 0x9aa   : > { %4239 = vmatprep.subr.bf16.mxu1 %v5064_v4 }
 0xa1a   : > { %v2473_v30 = vpop.permute.xlu1 %2472 }
 0xa1b   : > { %4106 = vmatmul.mubr.msk.f32.vlgmr.msra.gmra.mrb[16].mxu1 %vm1334_vm3, %v2473_v30 }
 0xa1c   : > { %4126 = vmatprep.mubr.msk.f32.mxu1 %vm5065_vm1, %v5066_v7 }
 0xa7b   : > { %v2376_v31 = vpop.f32.mrb[14].mxu1 }
 0xa7c   : > { %v2380_v33 = vmul.f32 0.17677669, %v2376_v31  ;;  %v4093_v34 = vpop.f32.mrb[15].mxu1 }
 0xa7e   : > { %v2381_v35 = vadd.f32 %v2380_v33, %v6007_v32 }
 0xa80   : > { %v2382_v36 = vsel %vm2012_vm4, %v2381_v35, -inf }
 0xa81   : > { %2383 = vmax.xlane.f32.xlu0 %v2382_v36 }
 0xaee   : > { %v2550_v37 = vpop.f32.mrb[16].mxu1 }
 0xaef   : > { %v2554_v38 = vmul.f32 0.17677669, %v2550_v37  ;;  %v4107_v39 = vpop.f32.mrb[17].mxu1 }
 0xaf1   : > { %v2555_v40 = vadd.f32 %v2554_v38, %v6007_v32 }
 0xaf3   : > { %v2556_v41 = vsel %vm2012_vm4, %v2555_v40, -inf }
 0xaf4   : > { %2557 = vmax.xlane.f32.xlu1 %v2556_v41 }
 0xb05   : > { %4475 = vrot.lane.b32.xlu1 %v5983_v20, %s5068_s0 }
 0xb09   : > { %4485 = vrot.lane.b32.xlu1 %v5983_v20, %s5072_s2 }
 0xb0d   : > { %2646 = vrot.lane.b32.xlu1 %v5992_v28, %s5072_s2 }
 0xb0e   : > { %v2384_v42 = vpop.xlane.xlu0 %2383 }
 0xb0f   : > { %v2385_v43 = vsub.f32 %v2381_v35, %v2384_v42 }
 0xb11   : > { %v2386_v44 = vmul.f32 1.442695, %v2385_v43 }
 0xb13   : > { %4522 = vpow2.f32 %v2386_v44 }
 0xb1d   : > { %v4523_v45 = vpop.eup %4522 }
 0xb1e   : > { %v2388_v46 = vsel %vm2012_vm4, %v4523_v45, 0.0 }
 0xb1f   : > { %2389 = vadd.xlane.f32.xlu0 %v2388_v46 }
 0xb81   : > { %v2558_v47 = vpop.xlane.xlu1 %2557 }
 0xb82   : > { %v2559_v48 = vsub.f32 %v2555_v40, %v2558_v47 }
 0xb84   : > { %v2560_v49 = vmul.f32 1.442695, %v2559_v48 }
 0xb85   : > { %v4476_v50 = vpop.permute.xlu1 %4475 }
 0xb86   : > { %4524 = vpow2.f32 %v2560_v49  ;;  %v4478_v9 = vunpack.i.h.bf16 %v4476_v50  ;;  %v4477_v51 = vunpack.i.l.bf16 %v4476_v50 }
 0xb88   : > { %v4226_v52 = vpack.c.bf16 %v4478_v9, %v4477_v51 }
 0xb89   : > { %v4486_v63 = vpop.permute.xlu1 %4485 }
 0xb8a   : > { %4227 = vmatpush3.bf16.msra.mxu0 %v4226_v52  ;;  %v4488_v2 = vunpack.i.h.bf16 %v4486_v63  ;;  %v4487_v6 = vunpack.i.l.bf16 %v4486_v63 }
 0xb8b   : > { %4232 = vmatprep.subr.bf16.mxu0 %v5064_v4 }
 0xb8c   : > { %v4236_v10 = vpack.c.bf16 %v4488_v2, %v4487_v6 }
 0xb8d   : > { %v2647_v11 = vpop.permute.xlu1 %2646 }
 0xb90   : > { %v4525_v53 = vpop.eup %4524 }
 0xb91   : > { %v2562_v54 = vsel %vm2012_vm4, %v4525_v53, 0.0 }
 0xb92   : > { %2563 = vadd.xlane.f32.xlu0 %v2562_v54 }
 0xba8   : > { %4480 = vrot.lane.b32.xlu0 %v5983_v20, %s5070_s20 }
 0xbac   : > { %v2390_v55 = vpop.xlane.xlu0 %2389 }
 0xbad   : > { %4526 = vrcp.f32 %v2390_v55 }
 0xbb7   : > { %v4527_v56 = vpop.eup %4526 }
 0xbb8   : > { %v2392_v57 = vmul.f32 %v4527_v56, %v4523_v45 }
 0xbba   : > { %4099 = vmatmul.mubr.msk.f32.vlgmr.msra.gmra.mrb[10].mxu0 %vm2012_vm4, %v2392_v57 }
 0xbbb   : > { %4112 = vmatprep.mubr.msk.f32.mxu0 %vm5065_vm1, %v5066_v7 }
 0xc1f   : > { %v2564_v58 = vpop.xlane.xlu0 %2563 }
 0xc20   : > { %4528 = vrcp.f32 %v2564_v58  ;;  %v3009_v58 = vld [vmem:[%s5757_s1] sm:$0xff] }
 0xc23   : > { %v4481_v59 = vpop.permute.xlu0 %4480 }
 0xc24   : > { %v4483_v60 = vunpack.i.h.bf16 %v4481_v59  ;;  %v4482_v61 = vunpack.i.l.bf16 %v4481_v59  ;;  %v3010_v59 = vld [vmem:[%s5757_s1 + $0x8] sm:$0xff] }
 0xc26   : > { %v4233_v62 = vpack.c.bf16 %v4483_v60, %v4482_v61  ;;  %v4250_v60 = vpack.c.bf16 %v3010_v59, %v3009_v58  ;;  %v3012_v61 = vld [vmem:[%s5757_s1 + $0x18] sm:$0xff] }
 0xc28   : > { %4234 = vmatpush3.bf16.msra.mxu0 %v4233_v62 }
 0xc29   : > { %4235 = vmatprep.subr.bf16.mxu0 %v5064_v4 }
 0xc2a   : > { %v4529_v0 = vpop.eup %4528 }
 0xc2b   : > { %v2566_v8 = vmul.f32 %v4529_v0, %v4525_v53 }
 0xc2d   : > { %4113 = vmatmul.mubr.msk.f32.vlgmr.msra.gmra.mrb[12].mxu0 %vm2012_vm4, %v2566_v8 }
 0xc2e   : > { %4119 = vmatprep.mubr.msk.f32.mxu0 %vm5065_vm1, %v5066_v7 }
 0xc31   : > { %4238 = vmatpush3.bf16.xpose.msk.msra.mxu0 %vm5979_vm6, %v4236_v10 }
 0xc32   : > { %4246 = vmatprep.subr.bf16.mxu0 %v5064_v4 }
 0xc38   : > { %4120 = vmatmul.mubr.msk.f32.vlgmr.msra.gmra.mrb[14].mxu0 %vm1334_vm3, %v2647_v11 }
 0xc39   : > { %4140 = vmatprep.mubr.msk.f32.mxu0 %vm5065_vm1, %v5066_v7 }
 0xc8d   : > { %v6037_v12 = vpop.f32.mrb[10].mxu0 }
 0xc8e   : > { %v4100_v14 = vpop.f32.mrb[11].mxu0 }
 0xd00   : > { %v2642_v15 = vpop.f32.mrb[12].mxu0 }
 0xd01   : > { %v4114_v16 = vpop.f32.mrb[13].mxu0 }
 0xd0b   : > { %v2724_v17 = vpop.f32.mrb[14].mxu0 }
 0xd0c   : > { %v2728_v18 = vmul.f32 0.17677669, %v2724_v17  ;;  %v4121_v21 = vpop.f32.mrb[15].mxu0 }
 0xd0e   : > { %v2729_v22 = vadd.f32 %v2728_v18, %v6007_v32 }
 0xd10   : > { %v2730_v23 = vsel %vm2012_vm4, %v2729_v22, -inf }
 0xd11   : > { %2731 = vmax.xlane.f32.xlu0 %v2730_v23 }
 0xd27   : > { %4490 = vrot.lane.b32.xlu0 %v5983_v20, %s5069_s8 }
 0xd2b   : > { %2820 = vrot.lane.b32.xlu0 %v5992_v28, %s5073_s27 }
 0xd9e   : > { %v2732_v24 = vpop.xlane.xlu0 %2731 }
 0xd9f   : > { %v2733_v25 = vsub.f32 %v2729_v22, %v2732_v24 }
 0xda1   : > { %v2734_v26 = vmul.f32 1.442695, %v2733_v25 }
 0xda2   : > { %v4491_v27 = vpop.permute.xlu0 %4490 }
 0xda3   : > { %4530 = vpow2.f32 %v2734_v26  ;;  %v4493_v29 = vunpack.i.h.bf16 %v4491_v27  ;;  %v4492_v30 = vunpack.i.l.bf16 %v4491_v27  ;;  %v3117_v26 = vld [vmem:[%s6379_s7] sm:$0xff]  ;;  %v3118_v27 = vld [vmem:[%s6379_s7 + $0x8] sm:$0xff] }
 0xda5   : > { %v4240_v31 = vpack.c.bf16 %v4493_v29, %v4492_v30  ;;  %v4256_v29 = vpack.c.bf16 %v3118_v27, %v3117_v26  ;;  %v3120_v30 = vld [vmem:[%s6379_s7 + $0x18] sm:$0xff] }
 0xda6   : > { %v2821_v41 = vpop.permute.xlu0 %2820 }
 0xda7   : > { %4241 = vmatpush3.bf16.msra.mxu1 %v4240_v31 }
 0xda8   : > { %4242 = vmatprep.subr.bf16.mxu1 %v5064_v4 }
 0xdad   : > { %v4531_v33 = vpop.eup %4530 }
 0xdae   : > { %v2736_v34 = vsel %vm2012_vm4, %v4531_v33, 0.0 }
 0xdaf   : > { %2737 = vadd.xlane.f32.xlu1 %v2736_v34  ;;  %v3203_v34 = vld [vmem:[%s5824_s21 + $0x8] sm:$0xff] }
 0xdc0   : > { %4495 = vrot.lane.b32.xlu1 %v5983_v20, %s5073_s27 }
 0xe3c   : > { %v2738_v35 = vpop.xlane.xlu1 %2737 }
 0xe3d   : > { %4532 = vrcp.f32 %v2738_v35  ;;  %v3204_v35 = vld [vmem:[%s5824_s21 + $0x10] sm:$0xff] }
 0xe40   : > { %v4496_v28 = vpop.permute.xlu1 %4495 }
 0xe41   : > { %v4498_v36 = vunpack.i.h.bf16 %v4496_v28  ;;  %v4497_v37 = vunpack.i.l.bf16 %v4496_v28 }
 0xe43   : > { %v4243_v40 = vpack.c.bf16 %v4498_v36, %v4497_v37  ;;  %v3205_v36 = vld [vmem:[%s5824_s21 + $0x18] sm:$0xff] }
 0xe44   : > { %v4265_v37 = vpack.c.bf16 %v3205_v36, %v3204_v35 }
 0xe47   : > { %v4533_v38 = vpop.eup %4532 }
 0xe48   : > { %v2740_v39 = vmul.f32 %v4533_v38, %v4531_v33  ;;  %v3202_v33 = vld [vmem:[%s5824_s21] sm:$0xff] }
 0xe49   : > { %v4262_v28 = vpack.c.bf16 %v3203_v34, %v3202_v33  ;;  %v3206_v38 = vld [vmem:[%s5824_s21 + $0x20] sm:$0xff] }
 0xe4a   : > { %4127 = vmatmul.mubr.msk.f32.vlgmr.msra.gmra.mrb[18].mxu1 %vm2012_vm4, %v2740_v39  ;;  %v3207_v39 = vld [vmem:[%s5824_s21 + $0x28] sm:$0xff] }
 0xe4b   : > { %4245 = vmatpush3.bf16.xpose.msk.msra.mxu1 %vm5979_vm6, %v4243_v40  ;;  %4133 = vmatprep.mubr.msk.f32.mxu1 %vm5065_vm1, %v5066_v7  ;;  %v4268_v40 = vpack.c.bf16 %v3207_v39, %v3206_v38 }
 0xe4c   : > { %4255 = vmatprep.subr.bf16.mxu1 %v5064_v4 }
 0xe52   : > { %4134 = vmatmul.mubr.msk.f32.vlgmr.msra.gmra.mrb[20].mxu1 %vm1334_vm3, %v2821_v41 }
 0xe53   : > { %4162 = vmatprep.mubr.msk.f32.mxu1 %vm5065_vm1, %v5066_v7  ;;  %4257 = vmatpush3.bf16.msra.mxu1 %v4256_v29 }
 0xe54   : > { %4258 = vmatprep.subr.bf16.mxu1 %v5064_v4 }
 0xf1d   : > { %v2816_v42 = vpop.f32.mrb[18].mxu1 }
 0xf1e   : > { %v4128_v43 = vpop.f32.mrb[19].mxu1 }
 0xf25   : > { %v2898_v44 = vpop.f32.mrb[20].mxu1 }
 0xf26   : > { %v2902_v45 = vmul.f32 0.17677669, %v2898_v44  ;;  %v4135_v46 = vpop.f32.mrb[21].mxu1  ;;  %v3109_v44 = vsub.s32 1, %v5958_v1 }
 0xf28   : > { %v2903_v47 = vadd.f32 %v2902_v45, %v6007_v32  ;;  %v3110_v45 = vrot.slane %v5962_v3, %v3109_v44 }
 0xf2a   : > { %v2904_v19 = vsel %vm2012_vm4, %v2903_v47, -inf }
 0xf2b   : > { %2905 = vmax.xlane.f32.xlu1 %v2904_v19  ;;  %v3115_v19 = vrot.slane %v5965_v5, %v3109_v44 }
 0xf3c   : > { %2995 = vrot.lane.b32.xlu1 %v2642_v15, %s5078_s29 }
 0xf40   : > { %2999 = vrot.lane.b32.xlu1 %v2816_v42, %s5079_s26 }
 0xfb8   : > { %v2906_v48 = vpop.xlane.xlu1 %2905 }
 0xfb9   : > { %v2907_v49 = vsub.f32 %v2903_v47, %v2906_v48 }
 0xfbb   : > { %v2908_v50 = vmul.f32 1.442695, %v2907_v49 }
 0xfbc   : > { %v2996_v2 = vpop.permute.xlu1 %2995 }
 0xfbd   : > { %4534 = vpow2.f32 %v2908_v50  ;;  %v3006_v8 = vsel %vm1334_vm3, %v6037_v12, %v2996_v2  ;;  %v3208_v50 = vld [vmem:[%s5824_s21 + $0x30] sm:$0xff] }
 0xfc0   : > { %v3000_v6 = vpop.permute.xlu1 %2999 }
 0xfc1   : > { %v3007_v10 = vsel %vm2012_vm4, %v3006_v8, %v3000_v6 }
 0xfc7   : > { %v4535_v9 = vpop.eup %4534 }
 0xfc8   : > { %v2910_v51 = vsel %vm2012_vm4, %v4535_v9, 0.0 }
 0xfc9   : > { %2911 = vadd.xlane.f32.xlu0 %v2910_v51  ;;  %v3899_v51 = vld [vmem:[%s6381_s24] ss:$0 sm:$0xff] }
 0xfdf   : > { %4500 = vrot.lane.b32.xlu0 %v5983_v20, %s5071_s25  ;;  %v3011_v20 = vld [vmem:[%s5757_s1 + $0x10] sm:$0xff]  ;;  %s6380_s1 = scalar_lea.vmem [#allocation14], %s5742_s9  ;;  %s6383_s9 = sld [smem:[#allocation38_spill]] }
 0xfe0   : > { %v4253_v62 = vpack.c.bf16 %v3012_v61, %v3011_v20  ;;  %v3897_v15 = vld [vmem:[%s6380_s1] ss:$0 sm:$0xff] }
 0xfe5   : > { %p3903_p9 = scmp.ne.s32.totalorder %s6383_s9, 1 }
 0xfe6   : > { %vm5082_vm8 = vmmov (!%p3903_p9), 0   ;;  %vm3405_vm9 = vcmask (!%p3903_p9), 408576  }
0x1056   : > { %v2912_v32 = vpop.xlane.xlu0 %2911 }
0x1057   : > { %4536 = vrcp.f32 %v2912_v32 }
0x105a   : > { %v4501_v52 = vpop.permute.xlu0 %4500 }
0x105b   : > { %v4503_v53 = vunpack.i.h.bf16 %v4501_v52  ;;  %v4502_v54 = vunpack.i.l.bf16 %v4501_v52 }
0x105d   : > { %v4247_v55 = vpack.c.bf16 %v4503_v53, %v4502_v54 }
0x105f   : > { %4248 = vmatpush3.bf16.msra.mxu0 %v4247_v55  ;;  %v3901_v55 = vld [vmem:[%s6382_s17] ss:$0 sm:$0xff] }
0x1060   : > { %4249 = vmatprep.subr.bf16.mxu0 %v5064_v4 }
0x1061   : > { %v4537_v56 = vpop.eup %4536 }
0x1062   : > { %v2914_v57 = vmul.f32 %v4537_v56, %v4535_v9 }
0x1064   : > { %4141 = vmatmul.mubr.msk.f32.vlgmr.msra.gmra.mrb[16].mxu0 %vm2012_vm4, %v2914_v57 }
0x1065   : > { %4151 = vmatprep.mubr.msk.f32.mxu0 %vm5065_vm1, %v5066_v7  ;;  %4251 = vmatpush3.bf16.msra.mxu0 %v4250_v60 }
0x1066   : > { %4252 = vmatprep.subr.bf16.mxu0 %v5064_v4 }
0x1069   : > { %4254 = vmatpush3.bf16.msra.mxu0 %v4253_v62 }
0x106a   : > { %4261 = vmatprep.subr.bf16.mxu0 %v5064_v4 }
0x1137   : > { %v2990_v63 = vpop.f32.mrb[16].mxu0 }
0x1138   : > { %3003 = vrot.lane.b32.xlu0 %v2990_v63, %s5080_s11  ;;  %v4142_v0 = vpop.f32.mrb[17].mxu0 }
0x11aa   : > { %v3004_v11 = vpop.permute.xlu0 %3003 }
0x11ab   : > { %v3008_v14 = vsel %vm2014_vm5, %v3007_v10, %v3004_v11  ;;  %v3308_v11 = vsub.s32 2, %v5958_v1 }
0x11ac   : > { %4152 = vmatmul.mubr.msk.f32.vlgmr.msra.gmra.mrb[18].mxu0 %vm1257_vm2, %v3008_v14 }
0x11ad   : > { %4181 = vmatprep.mubr.msk.f32.mxu0 %vm5065_vm1, %v5066_v7  ;;  %4263 = vmatpush3.bf16.msra.mxu0 %v4262_v28  ;;  %v3309_v14 = vrot.slane %v5962_v3, %v3308_v11  ;;  %v5083_v3 = vmov (!%p3903_p9), 0.0  }
0x11ae   : > { %4264 = vmatprep.subr.bf16.mxu0 %v5064_v4 }
0x11b1   : > { %4266 = vmatpush3.bf16.msra.mxu0 %v4265_v37 }
0x11b2   : > { %4267 = vmatprep.subr.bf16.mxu0 %v5064_v4 }
0x11b5   : > { %4269 = vmatpush3.bf16.msra.mxu0 %v4268_v40 }
0x11b6   : > { %4270 = vmatprep.subr.bf16.mxu0 %v5064_v4  ;;  %v3209_v4 = vld [vmem:[%s5824_s21 + $0x38] sm:$0xff] }
0x11b7   : > { %v4271_v9 = vpack.c.bf16 %v3209_v4, %v3208_v50 }
0x11b9   : > { %4272 = vmatpush3.bf16.msra.mxu0 %v4271_v9 }
0x127f   : > { %v3089_v16 = vpop.f32.mrb[18].mxu0 }
0x1280   : > { %v3090_v17 = vadd.f32 %v3897_v15, %v3089_v16  ;;  %v4153_v18 = vpop.f32.mrb[19].mxu0  ;;  %v3314_v16 = vrot.slane %v5965_v5, %v3308_v11 }
0x1282   : > { %v3093_v12 = vadd.f32 %v3090_v17, %v5969_v13  ;;  %v3119_v13 = vld [vmem:[%s6379_s7 + $0x10] sm:$0xff] }
0x1283   : > { %v4259_v31 = vpack.c.bf16 %v3120_v30, %v3119_v13 }
0x1284   : > { %v3094_v21 = vsel %vm1257_vm2, %v3093_v12, 0.0 }
0x1285   : > { %3095 = vadd.xlane.f32.xlu1 %v3094_v21  ;;  %4260 = vmatpush3.bf16.msra.mxu1 %v4259_v31  ;;  %v3321_v21 = vld [vmem:[#allocation20] sm:$0xff] (!%p3903_p9) }
0x1312   : > { %v3096_v22 = vpop.xlane.xlu1 %3095 }
0x1313   : > { %v3097_v23 = vmul.f32 0.03125, %v3096_v22  ;;  %v3322_v22 = vld [vmem:[#allocation20 + $0x8] sm:$0xff] (!%p3903_p9) }
0x1314   : > { %v4274_v1 = vpack.c.bf16 (!%p3903_p9), %v3322_v22, %v3321_v21 }
0x1315   : > { %v3098_v24 = vsub.f32 %v3093_v12, %v3097_v23  ;;  %v3323_v23 = vld [vmem:[#allocation20 + $0x10] sm:$0xff] (!%p3903_p9) }
0x1317   : > { %v3099_v25 = vmul.f32 %v3098_v24, %v3098_v24 }
0x1319   : > { %v3100_v7 = vsel %vm1257_vm2, %v3099_v25, 0.0  ;;  %v3324_v25 = vld [vmem:[#allocation20 + $0x18] sm:$0xff] (!%p3903_p9) }
0x131a   : > { %3101 = vadd.xlane.f32.xlu0 %v3100_v7  ;;  %v4277_v5 = vpack.c.bf16 (!%p3903_p9), %v3324_v25, %v3323_v23  ;;  %v3904_v7 = vld [vmem:[#allocation21] ss:$0 sm:$0xff] (!%p3903_p9) }
0x13a7   : > { %v3102_v41 = vpop.xlane.xlu0 %3101 }
0x13a8   : > { %v3103_v42 = vmul.f32 0.03125, %v3102_v41 }
0x13aa   : > { %v3104_v43 = vadd.f32 1e-05, %v3103_v42 }
0x13ac   : > { %4538 = vrsqrt.f32 %v3104_v43 }
0x13b6   : > { %v4539_v46 = vpop.eup %4538 }
0x13b7   : > { %v3106_v47 = vmul.f32 %v4539_v46, %v3098_v24  ;;  %v5081_v24 = vmov (!%p3903_p9), 0.0|0.0  }
0x13b8   : > { %4273 = vmatprep.subr.bf16.mxu0 (!%p3903_p9), %v5081_v24 }
0x13b9   : > { %v3111_v48 = vmul.f32 %v3110_v45, %v3106_v47 }
0x13bb   : > { %v3116_v49 = vadd.f32 %v3115_v19, %v3111_v48 }
0x13bd   : > { %4163 = vmatmul.mubr.msk.f32.vlgmr.msra.gmra.mrb[22].mxu1 %vm1257_vm2, %v3116_v49 }
0x1490   : > { %v3197_v32 = vpop.f32.mrb[22].mxu1 }
0x1491   : > { %v3198_v52 = vadd.f32 %v3899_v51, %v3197_v32  ;;  %v4164_v53 = vpop.f32.mrb[23].mxu1 }
0x1493   : > { %v3201_v54 = vmax.f32 %v3198_v52, 0.0 }
0x1495   : > { %4182 = vmatmul.mubr.msk.f32.vlgmr.msra.gmra.mrb[20].mxu0 %vm3217_vm7, %v3201_v54 }
0x1496   : > { %4192 = vmatprep.mubr.msk.f32.mxu0 (!%p3903_p9), %vm5082_vm8, %v5083_v3  ;;  %4275 = vmatpush3.bf16.msra.mxu0 (!%p3903_p9), %v4274_v1 }
0x1497   : > { %4276 = vmatprep.subr.bf16.mxu0 (!%p3903_p9), %v5081_v24 }
0x149a   : > { %4278 = vmatpush3.bf16.msra.mxu0 (!%p3903_p9), %v4277_v5 }
0x1568   : > { %v3287_v56 = vpop.f32.mrb[20].mxu0 }
0x1569   : > { %v3288_v57 = vadd.f32 %v3901_v55, %v3287_v56  ;;  %v4183_v58 = vpop.f32.mrb[21].mxu0 }
0x156b   : > { %v3291_v59 = vmax.f32 %v3288_v57, 0.0 }
0x156d   : > { %v3292_v20 = vadd.f32 %v3291_v59, %v3116_v49 }
0x156f   : > { %v3293_v60 = vsel %vm1257_vm2, %v3292_v20, 0.0 }
0x1570   : > { %3294 = vadd.xlane.f32.xlu0 %v3293_v60 }
0x15fd   : > { %v3295_v61 = vpop.xlane.xlu0 %3294 }
0x15fe   : > { %v3296_v62 = vmul.f32 0.03125, %v3295_v61 }
0x1600   : > { %v3297_v63 = vsub.f32 %v3292_v20, %v3296_v62 }
0x1602   : > { %v3298_v0 = vmul.f32 %v3297_v63, %v3297_v63 }
0x1604   : > { %v3299_v2 = vsel %vm1257_vm2, %v3298_v0, 0.0 }
0x1605   : > { %3300 = vadd.xlane.f32.xlu1 %v3299_v2 }
0x1692   : > { %v3301_v6 = vpop.xlane.xlu1 %3300 }
0x1693   : > { %v3302_v8 = vmul.f32 0.03125, %v3301_v6 }
0x1695   : > { %v3303_v10 = vadd.f32 1e-05, %v3302_v8 }
0x1697   : > { %4540 = vrsqrt.f32 %v3303_v10 }
0x16a1   : > { %v4541_v15 = vpop.eup %4540 }
0x16a2   : > { %v3305_v17 = vmul.f32 %v4541_v15, %v3297_v63  ;;  %3320 = sbr.rel (%p3903_p9) target bundleno = 6015 (0x177f), region = 164 }
0x16a4   : > { %v3310_v18 = vmul.f32 %v3309_v14, %v3305_v17 }
0x16a6   : > { %v3315_v12 = vadd.f32 %v3314_v16, %v3310_v18 }
0x16a8   : > { %3316 = vst.msk [vmem:[#allocation2] sm:$0xff] %vm1257_vm2, %v3315_v12  ;;  %4193 = vmatmul.mubr.msk.f32.vlgmr.msra.gmra.mrb[0].mxu0 (!%p3903_p9), %vm1257_vm2, %v3315_v12 }
0x177b   : > { %v3401_v26 = vpop.f32.mrb[0].mxu0 }
0x177c   : > { %v3402_v27 = vadd.f32 %v3904_v7, %v3401_v26  ;;  %v4194_v29 = vpop.f32.mrb[1].mxu0 }
0x177e   : > { %3406 = vst.msk [vmem:[%s5838_s15] sm:$0xff] %vm3405_vm9, %v3402_v27 }
0x177f PF: > { %s6384_s5 = sld [smem:[#allocation39_spill]]  ;;  %s6385_s21 = sld [smem:[#allocation48_spill]] }
0x1780   : > { %s6386_s30 = sld [smem:[#allocation74_spill]]  ;;  %s3421_s0 = sshll.u32 %s5838_s15, 4  ;;  %s3422_s0 = int_to_ptr.vmem [resolvable:$true] %s3421_s0 }
0x1781   : > { %s3408_s8 = scalar_lea.sflag [#allocation5], %s5728_s23  ;;  %s4898_s20 = scalar_lea.vmem %s3422_s0, 128 }
0x1782   : > { %p4899_p6 = scmp.ne.s32.totalorder %s3422_s0, %s4898_s20  ;;  %s5084_s25 = smov [#allocation23]  }
0x1783   : > { %s4902_s2 = sshll.u32 %s5084_s25, 4  ;;  %s4903_s2 = int_to_ptr.vmem [resolvable:$false] %s4902_s2 }
0x1784   : > { %s4904_s27 = scalar_lea.vmem %s4903_s2, 256  ;;  %p4905_p3 = scmp.lt.s32.totalorder %s3422_s0, %s4903_s2 }
0x1785   : > { %s3907_s13 = sshll.u32 %s6384_s5, 7  ;;  %p6388_p5 = scmp.ne.s32.totalorder %s6385_s21, 0 }
0x1786   : > { %s6387_s14 = smov %s6386_s30  ;;  %s6125_s6 = scalar_lea.hbm %s6386_s30, %s3907_s13 }
0x1787   : > { %p4900_p11 = pnand %p4899_p6, %p6388_p5  ;;  %p4906_p10 = scmp.lt.s32.totalorder %s4904_s27, %s4898_s20 }
0x1789   : > { %p4901_p7 = pneg %p4900_p11  ;;  %p4907_p1 = por %p4906_p10, %p4905_p3 }
0x178b   : > { %p4908_p8 = pnand %p4907_p1, %p4901_p7 }
0x178d   : > { %4911 = shalt.err (!%p4908_p8)
}
0x178e   : > { %s4912_s23 = scalar_lea.hbm %s6125_s6, 128  ;;  %s4916_s19 = scalar_lea.hbm %s6387_s14, 256 }
0x178f   : > { %p4913_p13 = scmp.ne.s32.totalorder %s6125_s6, %s4912_s23  ;;  %p4917_p12 = scmp.lt.u32.totalorder %s6125_s6, %s6387_s14 }
0x1790   : > { %p4918_p2 = scmp.lt.u32.totalorder %s4916_s19, %s4912_s23  ;;  %p4920_p6 = scmp.lt.u32.totalorder %s4912_s23, %s6125_s6 }
0x1791   : > { %p4914_p0 = pnand %p4913_p13, %p6388_p5 }
0x1792   : > { %p4919_p9 = por %p4918_p2, %p4917_p12 }
0x1793   : > { %p4915_p4 = pneg %p4914_p0 }
0x1794   : > { %p4921_p11 = por %p4920_p6, %p4919_p9 }
0x1796   : > { %p4922_p7 = pnand %p4921_p11, %p4915_p4 }
0x1798   : > { %4925 = shalt.err (!%p4922_p7)
}
0x1799   : > { %4307 = dma.vmem_to_hbm [thread:$0]  (%p6388_p5), %s3422_s0, 128, %s6125_s6, %s3408_s8  }
0x179a PF: > { %s6389_s29 = sld [smem:[#allocation42_spill]]  ;;  %s6390_s26 = sld [smem:[#allocation35_spill]] }
0x179b   : > { %s6391_s11 = sld [smem:[#allocation50_spill]] }
0x17a0   : > { %p4356_p3 = scmp.ge.s32.totalorder %s6389_s29, 2  ;;  %s3433_s22 = sand.u32 1, %s6390_s26  }
0x17a1   : > { %p6392_p10 = scmp.ne.s32.totalorder %s6391_s11, 0  ;;  %s3434_s10 = scalar_lea.sflag [#allocation5], %s3433_s22 }
0x17a3   : > { %p4348_p1 = pnand %p4356_p3, %p6392_p10 }
0x17a5   : > { %5003 = dma.done.wait (!%p4348_p1), %s3434_s10, 128  }
0x17a6   : > { %5005 = vsyncadd (!%p4348_p1), %s3434_s10, 4294967168  ;;  %s54_s6 = sadd.s32 1, %s6389_s29   ;;  %s6393_s3 = sld [smem:[#allocation33_spill]] }
0x17a7   : > { %p51_p8 = scmp.ge.s32.totalorder %s54_s6, 6   ;;  %s6394_s28 = sld [smem:[#allocation34_spill]] }
0x17a8   : > { %s6395_s29 = sld [smem:[#allocation47_spill]]  ;;  %s6396_s30 = sld [smem:[#allocation36_spill]] }
0x17a9   : > { %s6397_s4 = sld [smem:[#allocation37_spill]]  ;;  %s6398_s0 = sld [smem:[#allocation49_spill]] }
0x17aa   : > { %s6399_s23 = sld [smem:[#allocation40_spill]]  ;;  %s6400_s1 = sld [smem:[#allocation41_spill]] }
0x17ab   : > { %s6401_s5 = sld [smem:[#allocation45_spill]]  ;;  %s6402_s24 = sld [smem:[#allocation46_spill]] }
0x17ac   :  { %53 = sbr.rel (!%p51_p8) target bundleno = 44 (0x2c), region = 308 }
0x17b3   :  { %3439 = vsyncpa [#allocation4], 1 }
0x17b4   :  { %3441 = vsyncpa [#allocation4 + $0x1], 1 }
0x17b5   :  { %3442 = vsyncpa [#allocation7], 1 }
0x17b6   :  { %3444 = vsyncpa [#allocation7 + $0x1], 1 }
0x17b7   :  { %3445 = vsyncpa [#allocation10], 1 }
0x17b8   :  { %3447 = vsyncpa [#allocation10 + $0x1], 1 }
0x17b9   :  { %3448 = vsyncpa [#allocation13], 1 }
0x17ba   :  { %3450 = vsyncpa [#allocation13 + $0x1], 1 }
0x17bb   :  { %3451 = vsyncpa [#allocation16], 1 }
0x17bc   :  { %3453 = vsyncpa [#allocation16 + $0x1], 1 }
0x17bd   :  { %3454 = vsyncpa [#allocation19], 1 }
0x17be   :  { %3456 = vsyncpa [#allocation19 + $0x1], 1 }
0x17bf   :  { %3457 = vsyncpa [#allocation22], 1 }
0x17c0   :  { %3458 = vsyncpa [#allocation5], 1 }
0x17c1   :  { %3460 = vsyncpa [#allocation5 + $0x1], 1 }

</bundles_post_ra>
